<compile_context>
chip_gen: v5e
topology: v5e:2x2
jax: 0.10.0
libtpu: 0.0.40
codegen_flags: <defaults>
</compile_context>

<pallas_src>
import functools

import jax
import jax.numpy as jnp
from jax.experimental import pallas as pl
from jax.experimental.pallas import tpu as pltpu

# MLP architecture from FCN.__init__
LAYER_SIZES = [500, 100, 100, 100, 50, 1]
_LAYER_PAIRS = list(zip(LAYER_SIZES[:-1], LAYER_SIZES[1:]))


def _fcn_cluster_kernel(x_ref,
                        w1_ref, b1_ref,
                        w2_ref, b2_ref,
                        w3_ref, b3_ref,
                        w4_ref, b4_ref,
                        w5_ref, b5_ref,
                        o_ref):
    g = pl.program_id(1)          # reduction ("arbitrary") axis within a partition
    K = w1_ref.shape[0]           # networks processed per grid step
    B, D_in = x_ref.shape

    # Shared input, replicated across the K sub-networks of this block.
    x = x_ref[...]                                    # (B, 500)
    h = jnp.broadcast_to(x[None], (K, B, D_in))       # (K, B, 500)

    def dense(h, w_ref, b_ref, relu):
        # w_ref: (K, din, dout), b_ref: (K, 1, dout)
        y = jnp.einsum('kbi,kio->kbo', h, w_ref[...],
                       preferred_element_type=jnp.float32)
        y = y + b_ref[...]
        if relu:
            y = jnp.maximum(y, 0.0)
        return y

    h = dense(h, w1_ref, b1_ref, relu=True)    # (K, B, 100)
    h = dense(h, w2_ref, b2_ref, relu=True)    # (K, B, 100)
    h = dense(h, w3_ref, b3_ref, relu=True)    # (K, B, 100)
    h = dense(h, w4_ref, b4_ref, relu=True)    # (K, B, 50)
    y = dense(h, w5_ref, b5_ref, relu=False)   # (K, B, 1)

    blk_max = jnp.max(y, axis=0, keepdims=True)   # (1, B, 1): max over this block's K nets

    # Running max across grid steps; output block is resident in VMEM for the
    # whole partition (block index depends only on the partition axis).
    @pl.when(g == 0)
    def _():
        o_ref[...] = blk_max

    @pl.when(g > 0)
    def _():
        o_ref[...] = jnp.maximum(o_ref[...], blk_max)


def _pad_networks(arr, n_pad):
    """Pad the network axis by replicating the last network (max is unchanged)."""
    if n_pad == 0:
        return arr
    pad = jnp.broadcast_to(arr[-1:], (n_pad,) + arr.shape[1:])
    return jnp.concatenate([arr, pad], axis=0)


def fcn_cluster_forward(x, weights, biases, *,
                        networks_per_step=16, num_partitions=2):
    """x: (B, 500); weights[i]: (N, in_i, out_i); biases[i]: (N, 1, out_i)."""
    B = x.shape[0]
    N = weights[0].shape[0]

    K = min(networks_per_step, N)          # networks per grid step
    P = num_partitions                     # leading "parallel" axis (v7x: 2 TCs)

    # Pad N up to a multiple of P * K with duplicate networks (max unchanged).
    n_pad_total = pl.cdiv(N, P * K) * (P * K)
    n_extra = n_pad_total - N
    weights_p = [_pad_networks(w, n_extra) for w in weights]
    biases_p = [_pad_networks(b, n_extra) for b in biases]
    G = n_pad_total // (P * K)             # grid steps per partition

    # --- Block specs -------------------------------------------------------
    in_specs = [pl.BlockSpec((B, LAYER_SIZES[0]), lambda p, g: (0, 0))]
    args = [x]
    for w, b in zip(weights_p, biases_p):
        _, din, dout = w.shape
        in_specs.append(pl.BlockSpec((K, din, dout), lambda p, g: (p * G + g, 0, 0)))
        in_specs.append(pl.BlockSpec((K, 1, dout), lambda p, g: (p * G + g, 0, 0)))
        args.append(w)
        args.append(b)

    out_spec = pl.BlockSpec((1, B, 1), lambda p, g: (p, 0, 0))

    # --- VMEM budget & cost hint ------------------------------------------
    per_net_param_floats = sum((din + 1) * dout for din, dout in _LAYER_PAIRS)
    per_step_param_bytes = 4 * K * per_net_param_floats
    vmem_limit = min(48 * 1024 * 1024,
                     max(16 * 1024 * 1024, 3 * per_step_param_bytes + (4 << 20)))

    flops = 2 * B * n_pad_total * sum(din * dout for din, dout in _LAYER_PAIRS)
    bytes_accessed = 4 * (B * LAYER_SIZES[0]
                          + n_pad_total * per_net_param_floats
                          + P * B)
    cost = pl.CostEstimate(flops=flops, transcendentals=0,
                           bytes_accessed=bytes_accessed)

    out = pl.pallas_call(
        _fcn_cluster_kernel,
        out_shape=jax.ShapeDtypeStruct((P, B, 1), jnp.float32),
        grid_spec=pltpu.PrefetchScalarGridSpec(
            num_scalar_prefetch=0,
            grid=(P, G),
            in_specs=in_specs,
            out_specs=out_spec,
        ),
        compiler_params=pltpu.CompilerParams(
            # Partition axis is independent (megacore on v7x); the network-block
            # axis is a running-max reduction -> must stay "arbitrary".
            dimension_semantics=("parallel", "arbitrary"),
            vmem_limit_bytes=int(vmem_limit),
        ),
        cost_estimate=cost,
    )(*args)

    # Combine the per-partition partial maxima.
    return jnp.max(out, axis=0)            # (B, 1)


def init_params(key, num_networks):
    """Deterministic synthetic init: uniform(-bound, bound) like PyTorch Linear."""
    weights, biases = [], []
    for din, dout in _LAYER_PAIRS:
        key, kw, kb = jax.random.split(key, 3)
        bound = 1.0 / jnp.sqrt(jnp.float32(din))
        w = jax.random.uniform(kw, (num_networks, din, dout),
                               dtype=jnp.float32, minval=-bound, maxval=bound)
        b = jax.random.uniform(kb, (num_networks, 1, dout),
                               dtype=jnp.float32, minval=-bound, maxval=bound)
        weights.append(w)
        biases.append(b)
    return weights, biases


def reference_forward(x, weights, biases):
    """Plain-JAX reference matching FCNCluster.forward semantics."""
    outs = []
    N = weights[0].shape[0]
    for n in range(N):
        h = x
        for i, (w, b) in enumerate(zip(weights, biases)):
            h = h @ w[n] + b[n]
            if i < len(weights) - 1:
                h = jnp.maximum(h, 0.0)
        outs.append(h)                       # (B, 1)
    stacked = jnp.stack(outs, axis=1)        # (B, N, 1)
    return jnp.max(stacked, axis=1)          # (B, 1)


if __name__ == "__main__":
    key = jax.random.PRNGKey(0)
    num_networks = 10
    batch = 2

    key, kx = jax.random.split(key)
    x = jax.random.normal(kx, (batch, LAYER_SIZES[0]), dtype=jnp.float32)

    weights, biases = init_params(key, num_networks)

    # Small K / 2 partitions so the test exercises multi-step accumulation,
    # the parallel partition axis, and the duplicate-network padding path.
    out = fcn_cluster_forward(x, weights, biases,
                              networks_per_step=4, num_partitions=2)
    out = jax.block_until_ready(out)

    ref = reference_forward(x, weights, biases)
    assert out.shape == (batch, 1)
    assert jnp.allclose(out, ref, atol=1e-4, rtol=1e-4), (out, ref)

    print("KERNEL_OK")
</pallas_src>

<mosaic_0001>
module attributes {stable_mosaic.version = 11 : i64} {
  func.func @_fcn_cluster_kernel(%arg0: i32, %arg1: i32, %arg2: memref<2x500xf32, #tpu.memory_space<vmem>>, %arg3: memref<4x500x100xf32, #tpu.memory_space<vmem>>, %arg4: memref<4x1x100xf32, #tpu.memory_space<vmem>>, %arg5: memref<4x100x100xf32, #tpu.memory_space<vmem>>, %arg6: memref<4x1x100xf32, #tpu.memory_space<vmem>>, %arg7: memref<4x100x100xf32, #tpu.memory_space<vmem>>, %arg8: memref<4x1x100xf32, #tpu.memory_space<vmem>>, %arg9: memref<4x100x50xf32, #tpu.memory_space<vmem>>, %arg10: memref<4x1x50xf32, #tpu.memory_space<vmem>>, %arg11: memref<4x50x1xf32, #tpu.memory_space<vmem>>, %arg12: memref<4x1x1xf32, #tpu.memory_space<vmem>>, %arg13: memref<1x2x1xf32, #tpu.memory_space<vmem>>) attributes {dimension_semantics = [#tpu.dimension_semantics<parallel>, #tpu.dimension_semantics<arbitrary>], iteration_bounds = array<i64: 2, 2>, scalar_prefetch = 0 : i64, scratch_operands = 0 : i64, tpu.core_type = #tpu.core_type<tc>, window_params = [{pipeline_mode = #tpu.pipeline_mode<synchronous>, transform_indices = @transform_0, window_bounds = array<i64: 2, 500>}, {transform_indices = @transform_1, window_bounds = array<i64: 4, 500, 100>}, {transform_indices = @transform_2, window_bounds = array<i64: 4, 1, 100>}, {transform_indices = @transform_3, window_bounds = array<i64: 4, 100, 100>}, {transform_indices = @transform_4, window_bounds = array<i64: 4, 1, 100>}, {transform_indices = @transform_5, window_bounds = array<i64: 4, 100, 100>}, {transform_indices = @transform_6, window_bounds = array<i64: 4, 1, 100>}, {transform_indices = @transform_7, window_bounds = array<i64: 4, 100, 50>}, {transform_indices = @transform_8, window_bounds = array<i64: 4, 1, 50>}, {transform_indices = @transform_9, window_bounds = array<i64: 4, 50, 1>}, {transform_indices = @transform_10, window_bounds = array<i64: 4, 1, 1>}, {transform_indices = @transform_11, window_bounds = array<i64: 1, 2, 1>}]} {
    %c0 = arith.constant 0 : index
    %c0_0 = arith.constant 0 : index
    %0 = vector.load %arg2[%c0, %c0_0] : memref<2x500xf32, #tpu.memory_space<vmem>>, vector<2x500xf32>
    %1 = vector.shape_cast %0 : vector<2x500xf32> to vector<1x2x500xf32>
    %2 = vector.shape_cast %1 : vector<1x2x500xf32> to vector<1x2x500xf32>
    %3 = vector.broadcast %2 : vector<1x2x500xf32> to vector<4x2x500xf32>
    %c0_1 = arith.constant 0 : index
    %c0_2 = arith.constant 0 : index
    %c0_3 = arith.constant 0 : index
    %4 = vector.load %arg3[%c0_1, %c0_2, %c0_3] : memref<4x500x100xf32, #tpu.memory_space<vmem>>, vector<4x500x100xf32>
    "tpu.trace_start"() <{level = 10 : i32, message = "kbi,kio->kbo"}> : () -> ()
    %cst = arith.constant dense<0.000000e+00> : vector<4x2x100xf32>
    %5 = tpu.matmul %3, %4, %cst {dimension_numbers = #tpu.dot_dimension_numbers<[2], [1], [1], [2], [0, 0, 0, 1, 1, 2], [0], [0]>} : vector<4x2x500xf32>, vector<4x500x100xf32>, vector<4x2x100xf32> -> vector<4x2x100xf32>
    "tpu.trace_stop"() : () -> ()
    %c0_4 = arith.constant 0 : index
    %c0_5 = arith.constant 0 : index
    %c0_6 = arith.constant 0 : index
    %6 = vector.load %arg4[%c0_4, %c0_5, %c0_6] : memref<4x1x100xf32, #tpu.memory_space<vmem>>, vector<4x1x100xf32>
    %7 = vector.broadcast %6 : vector<4x1x100xf32> to vector<4x2x100xf32>
    %8 = arith.addf %5, %7 : vector<4x2x100xf32>
    %cst_7 = arith.constant 0.000000e+00 : f32
    %9 = vector.broadcast %cst_7 : f32 to vector<4x2x100xf32>
    %10 = arith.maximumf %8, %9 : vector<4x2x100xf32>
    %c0_8 = arith.constant 0 : index
    %c0_9 = arith.constant 0 : index
    %c0_10 = arith.constant 0 : index
    %11 = vector.load %arg5[%c0_8, %c0_9, %c0_10] : memref<4x100x100xf32, #tpu.memory_space<vmem>>, vector<4x100x100xf32>
    "tpu.trace_start"() <{level = 10 : i32, message = "kbi,kio->kbo"}> : () -> ()
    %cst_11 = arith.constant dense<0.000000e+00> : vector<4x2x100xf32>
    %12 = tpu.matmul %10, %11, %cst_11 {dimension_numbers = #tpu.dot_dimension_numbers<[2], [1], [1], [2], [0, 0, 0, 1, 1, 2], [0], [0]>} : vector<4x2x100xf32>, vector<4x100x100xf32>, vector<4x2x100xf32> -> vector<4x2x100xf32>
    "tpu.trace_stop"() : () -> ()
    %c0_12 = arith.constant 0 : index
    %c0_13 = arith.constant 0 : index
    %c0_14 = arith.constant 0 : index
    %13 = vector.load %arg6[%c0_12, %c0_13, %c0_14] : memref<4x1x100xf32, #tpu.memory_space<vmem>>, vector<4x1x100xf32>
    %14 = vector.broadcast %13 : vector<4x1x100xf32> to vector<4x2x100xf32>
    %15 = arith.addf %12, %14 : vector<4x2x100xf32>
    %cst_15 = arith.constant 0.000000e+00 : f32
    %16 = vector.broadcast %cst_15 : f32 to vector<4x2x100xf32>
    %17 = arith.maximumf %15, %16 : vector<4x2x100xf32>
    %c0_16 = arith.constant 0 : index
    %c0_17 = arith.constant 0 : index
    %c0_18 = arith.constant 0 : index
    %18 = vector.load %arg7[%c0_16, %c0_17, %c0_18] : memref<4x100x100xf32, #tpu.memory_space<vmem>>, vector<4x100x100xf32>
    "tpu.trace_start"() <{level = 10 : i32, message = "kbi,kio->kbo"}> : () -> ()
    %cst_19 = arith.constant dense<0.000000e+00> : vector<4x2x100xf32>
    %19 = tpu.matmul %17, %18, %cst_19 {dimension_numbers = #tpu.dot_dimension_numbers<[2], [1], [1], [2], [0, 0, 0, 1, 1, 2], [0], [0]>} : vector<4x2x100xf32>, vector<4x100x100xf32>, vector<4x2x100xf32> -> vector<4x2x100xf32>
    "tpu.trace_stop"() : () -> ()
    %c0_20 = arith.constant 0 : index
    %c0_21 = arith.constant 0 : index
    %c0_22 = arith.constant 0 : index
    %20 = vector.load %arg8[%c0_20, %c0_21, %c0_22] : memref<4x1x100xf32, #tpu.memory_space<vmem>>, vector<4x1x100xf32>
    %21 = vector.broadcast %20 : vector<4x1x100xf32> to vector<4x2x100xf32>
    %22 = arith.addf %19, %21 : vector<4x2x100xf32>
    %cst_23 = arith.constant 0.000000e+00 : f32
    %23 = vector.broadcast %cst_23 : f32 to vector<4x2x100xf32>
    %24 = arith.maximumf %22, %23 : vector<4x2x100xf32>
    %c0_24 = arith.constant 0 : index
    %c0_25 = arith.constant 0 : index
    %c0_26 = arith.constant 0 : index
    %25 = vector.load %arg9[%c0_24, %c0_25, %c0_26] : memref<4x100x50xf32, #tpu.memory_space<vmem>>, vector<4x100x50xf32>
    "tpu.trace_start"() <{level = 10 : i32, message = "kbi,kio->kbo"}> : () -> ()
    %cst_27 = arith.constant dense<0.000000e+00> : vector<4x2x50xf32>
    %26 = tpu.matmul %24, %25, %cst_27 {dimension_numbers = #tpu.dot_dimension_numbers<[2], [1], [1], [2], [0, 0, 0, 1, 1, 2], [0], [0]>} : vector<4x2x100xf32>, vector<4x100x50xf32>, vector<4x2x50xf32> -> vector<4x2x50xf32>
    "tpu.trace_stop"() : () -> ()
    %c0_28 = arith.constant 0 : index
    %c0_29 = arith.constant 0 : index
    %c0_30 = arith.constant 0 : index
    %27 = vector.load %arg10[%c0_28, %c0_29, %c0_30] : memref<4x1x50xf32, #tpu.memory_space<vmem>>, vector<4x1x50xf32>
    %28 = vector.broadcast %27 : vector<4x1x50xf32> to vector<4x2x50xf32>
    %29 = arith.addf %26, %28 : vector<4x2x50xf32>
    %cst_31 = arith.constant 0.000000e+00 : f32
    %30 = vector.broadcast %cst_31 : f32 to vector<4x2x50xf32>
    %31 = arith.maximumf %29, %30 : vector<4x2x50xf32>
    %c0_32 = arith.constant 0 : index
    %c0_33 = arith.constant 0 : index
    %c0_34 = arith.constant 0 : index
    %32 = vector.load %arg11[%c0_32, %c0_33, %c0_34] : memref<4x50x1xf32, #tpu.memory_space<vmem>>, vector<4x50x1xf32>
    "tpu.trace_start"() <{level = 10 : i32, message = "kbi,kio->kbo"}> : () -> ()
    %cst_35 = arith.constant dense<0.000000e+00> : vector<4x2x1xf32>
    %33 = tpu.matmul %31, %32, %cst_35 {dimension_numbers = #tpu.dot_dimension_numbers<[2], [1], [1], [2], [0, 0, 0, 1, 1, 2], [0], [0]>} : vector<4x2x50xf32>, vector<4x50x1xf32>, vector<4x2x1xf32> -> vector<4x2x1xf32>
    "tpu.trace_stop"() : () -> ()
    %c0_36 = arith.constant 0 : index
    %c0_37 = arith.constant 0 : index
    %c0_38 = arith.constant 0 : index
    %34 = vector.load %arg12[%c0_36, %c0_37, %c0_38] : memref<4x1x1xf32, #tpu.memory_space<vmem>>, vector<4x1x1xf32>
    %35 = vector.broadcast %34 : vector<4x1x1xf32> to vector<4x2x1xf32>
    %36 = arith.addf %33, %35 : vector<4x2x1xf32>
    %cst_39 = arith.constant dense<0xFF800000> : vector<2x1xf32>
    %37 = vector.multi_reduction <maximumf>, %36, %cst_39 [0] : vector<4x2x1xf32> to vector<2x1xf32>
    %38 = vector.shape_cast %37 : vector<2x1xf32> to vector<1x2x1xf32>
    %c0_i32 = arith.constant 0 : i32
    %39 = arith.cmpi eq, %arg1, %c0_i32 : i32
    %40 = arith.extui %39 : i1 to i32
    %c0_i32_40 = arith.constant 0 : i32
    %41 = arith.cmpi ne, %40, %c0_i32_40 : i32
    scf.if %41 {
      %c0_43 = arith.constant 0 : index
      %c0_44 = arith.constant 0 : index
      %c0_45 = arith.constant 0 : index
      %45 = vector.load %arg13[%c0_43, %c0_44, %c0_45] : memref<1x2x1xf32, #tpu.memory_space<vmem>>, vector<1x2x1xf32>
      tpu.vector_store %arg13[%c0_43, %c0_44, %c0_45], %38 {strides = array<i32>} : memref<1x2x1xf32, #tpu.memory_space<vmem>>, vector<1x2x1xf32>,
    } else {
    }
    %c0_i32_41 = arith.constant 0 : i32
    %42 = arith.cmpi sgt, %arg1, %c0_i32_41 : i32
    %43 = arith.extui %42 : i1 to i32
    %c0_i32_42 = arith.constant 0 : i32
    %44 = arith.cmpi ne, %43, %c0_i32_42 : i32
    scf.if %44 {
      %c0_43 = arith.constant 0 : index
      %c0_44 = arith.constant 0 : index
      %c0_45 = arith.constant 0 : index
      %45 = vector.load %arg13[%c0_43, %c0_44, %c0_45] : memref<1x2x1xf32, #tpu.memory_space<vmem>>, vector<1x2x1xf32>
      %46 = arith.maximumf %45, %38 : vector<1x2x1xf32>
      %c0_46 = arith.constant 0 : index
      %c0_47 = arith.constant 0 : index
      %c0_48 = arith.constant 0 : index
      %47 = vector.load %arg13[%c0_46, %c0_47, %c0_48] : memref<1x2x1xf32, #tpu.memory_space<vmem>>, vector<1x2x1xf32>
      tpu.vector_store %arg13[%c0_46, %c0_47, %c0_48], %46 {strides = array<i32>} : memref<1x2x1xf32, #tpu.memory_space<vmem>>, vector<1x2x1xf32>,
    } else {
    }
    return
  }
  func.func @transform_0(%arg0: i32, %arg1: i32) -> (i32, i32) {
    %c0_i32 = arith.constant 0 : i32
    %c0_i32_0 = arith.constant 0 : i32
    %c0_i32_1 = arith.constant 0 : i32
    return %c0_i32, %c0_i32_0 : i32, i32
  }
  func.func @transform_1(%arg0: i32, %arg1: i32) -> (i32, i32, i32) {
    %c2_i32 = arith.constant 2 : i32
    %0 = arith.muli %arg0, %c2_i32 : i32
    %1 = arith.addi %0, %arg1 : i32
    %c0_i32 = arith.constant 0 : i32
    %c0_i32_0 = arith.constant 0 : i32
    %c0_i32_1 = arith.constant 0 : i32
    return %1, %c0_i32, %c0_i32_0 : i32, i32, i32
  }
  func.func @transform_2(%arg0: i32, %arg1: i32) -> (i32, i32, i32) {
    %c2_i32 = arith.constant 2 : i32
    %0 = arith.muli %arg0, %c2_i32 : i32
    %1 = arith.addi %0, %arg1 : i32
    %c0_i32 = arith.constant 0 : i32
    %c0_i32_0 = arith.constant 0 : i32
    %c0_i32_1 = arith.constant 0 : i32
    return %1, %c0_i32, %c0_i32_0 : i32, i32, i32
  }
  func.func @transform_3(%arg0: i32, %arg1: i32) -> (i32, i32, i32) {
    %c2_i32 = arith.constant 2 : i32
    %0 = arith.muli %arg0, %c2_i32 : i32
    %1 = arith.addi %0, %arg1 : i32
    %c0_i32 = arith.constant 0 : i32
    %c0_i32_0 = arith.constant 0 : i32
    %c0_i32_1 = arith.constant 0 : i32
    return %1, %c0_i32, %c0_i32_0 : i32, i32, i32
  }
  func.func @transform_4(%arg0: i32, %arg1: i32) -> (i32, i32, i32) {
    %c2_i32 = arith.constant 2 : i32
    %0 = arith.muli %arg0, %c2_i32 : i32
    %1 = arith.addi %0, %arg1 : i32
    %c0_i32 = arith.constant 0 : i32
    %c0_i32_0 = arith.constant 0 : i32
    %c0_i32_1 = arith.constant 0 : i32
    return %1, %c0_i32, %c0_i32_0 : i32, i32, i32
  }
  func.func @transform_5(%arg0: i32, %arg1: i32) -> (i32, i32, i32) {
    %c2_i32 = arith.constant 2 : i32
    %0 = arith.muli %arg0, %c2_i32 : i32
    %1 = arith.addi %0, %arg1 : i32
    %c0_i32 = arith.constant 0 : i32
    %c0_i32_0 = arith.constant 0 : i32
    %c0_i32_1 = arith.constant 0 : i32
    return %1, %c0_i32, %c0_i32_0 : i32, i32, i32
  }
  func.func @transform_6(%arg0: i32, %arg1: i32) -> (i32, i32, i32) {
    %c2_i32 = arith.constant 2 : i32
    %0 = arith.muli %arg0, %c2_i32 : i32
    %1 = arith.addi %0, %arg1 : i32
    %c0_i32 = arith.constant 0 : i32
    %c0_i32_0 = arith.constant 0 : i32
    %c0_i32_1 = arith.constant 0 : i32
    return %1, %c0_i32, %c0_i32_0 : i32, i32, i32
  }
  func.func @transform_7(%arg0: i32, %arg1: i32) -> (i32, i32, i32) {
    %c2_i32 = arith.constant 2 : i32
    %0 = arith.muli %arg0, %c2_i32 : i32
    %1 = arith.addi %0, %arg1 : i32
    %c0_i32 = arith.constant 0 : i32
    %c0_i32_0 = arith.constant 0 : i32
    %c0_i32_1 = arith.constant 0 : i32
    return %1, %c0_i32, %c0_i32_0 : i32, i32, i32
  }
  func.func @transform_8(%arg0: i32, %arg1: i32) -> (i32, i32, i32) {
    %c2_i32 = arith.constant 2 : i32
    %0 = arith.muli %arg0, %c2_i32 : i32
    %1 = arith.addi %0, %arg1 : i32
    %c0_i32 = arith.constant 0 : i32
    %c0_i32_0 = arith.constant 0 : i32
    %c0_i32_1 = arith.constant 0 : i32
    return %1, %c0_i32, %c0_i32_0 : i32, i32, i32
  }
  func.func @transform_9(%arg0: i32, %arg1: i32) -> (i32, i32, i32) {
    %c2_i32 = arith.constant 2 : i32
    %0 = arith.muli %arg0, %c2_i32 : i32
    %1 = arith.addi %0, %arg1 : i32
    %c0_i32 = arith.constant 0 : i32
    %c0_i32_0 = arith.constant 0 : i32
    %c0_i32_1 = arith.constant 0 : i32
    return %1, %c0_i32, %c0_i32_0 : i32, i32, i32
  }
  func.func @transform_10(%arg0: i32, %arg1: i32) -> (i32, i32, i32) {
    %c2_i32 = arith.constant 2 : i32
    %0 = arith.muli %arg0, %c2_i32 : i32
    %1 = arith.addi %0, %arg1 : i32
    %c0_i32 = arith.constant 0 : i32
    %c0_i32_0 = arith.constant 0 : i32
    %c0_i32_1 = arith.constant 0 : i32
    return %1, %c0_i32, %c0_i32_0 : i32, i32, i32
  }
  func.func @transform_11(%arg0: i32, %arg1: i32) -> (i32, i32, i32) {
    %c0_i32 = arith.constant 0 : i32
    %c0_i32_0 = arith.constant 0 : i32
    %c0_i32_1 = arith.constant 0 : i32
    return %arg0, %c0_i32, %c0_i32_0 : i32, i32, i32
  }
}

</mosaic_0001>

<bundles_post_ra>
// kernel: tpu_custom_call.1
= control target key start
LH: loop header
LB: loop body
LE: loop exit
PB: predicated region body
PF: predicated region fallthrough
CT: control target
= control target key end

     0   :  { %s2499_s17 = smov 0   ;;  %s2501_s18 = smov 0   ;;  %s3163_s0 = inlined_call_operand.vmem [shape: f32[2,500], index: 0, kind: input, shape index: {}]   ;;  %s3164_s1 = inlined_call_operand.vmem [shape: f32[16,500,100], index: 1, kind: input, shape index: {}]   ;;  %s3165_s2 = inlined_call_operand.vmem [shape: f32[16,1,100], index: 2, kind: input, shape index: {}]   ;;  %s3166_s3 = inlined_call_operand.vmem [shape: f32[16,100,100], index: 3, kind: input, shape index: {}]   ;;  %s3167_s4 = inlined_call_operand.vmem [shape: f32[16,1,100], index: 4, kind: input, shape index: {}]   ;;  %s3168_s5 = inlined_call_operand.vmem [shape: f32[16,100,100], index: 5, kind: input, shape index: {}]   ;;  %s3169_s6 = inlined_call_operand.vmem [shape: f32[16,1,100], index: 6, kind: input, shape index: {}]   ;;  %s3170_s7 = inlined_call_operand.vmem [shape: f32[16,100,50], index: 7, kind: input, shape index: {}]   ;;  %s3171_s8 = inlined_call_operand.vmem [shape: f32[16,1,50], index: 8, kind: input, shape index: {}]   ;;  %s3172_s9 = inlined_call_operand.vmem [shape: f32[16,50,1], index: 9, kind: input, shape index: {}]   ;;  %s3173_s10 = inlined_call_operand.vmem [shape: f32[16,1,1], index: 10, kind: input, shape index: {}]   ;;  %s3174_s11 = inlined_call_operand.vmem [shape: f32[2,2,1], index: 11, kind: output, shape index: {}]  }
   0x1   :  { %s2503_s19 = smov 0   ;;  %s2505_s20 = smov 0  }
   0x2   :  { %s2507_s21 = smov 0  }
   0x3 LB: > { %s30_s22 = sadd.s32 1, %s2429_s19  ;;  %s33_s23 = sadd.s32 1, %s2433_s20  ;;  %s2437_s21 = sphi %s2507_s21, %s21_s21   ;;  %s2433_s20 = sphi %s2505_s20, %s3178_s20   ;;  %s2429_s19 = sphi %s2503_s19, %s3177_s19   ;;  %s2425_s18 = sphi %s2501_s18, %s3176_s18   ;;  %s2421_s17 = sphi %s2499_s17, %s3175_s17  }
   0x4   : > { %p31_p0 = scmp.ge.s32.totalorder %s30_s22, 2  ;;  %p2265_p1 = scmp.ge.s32.totalorder %s2437_s21, 1 }
   0x5   : > { %p529_p2 = scmp.lt.s32.totalorder %s2437_s21, 5 }
   0x6   : > { %s3180_s22 = smov (%p31_p0, %s30_s22), 0  ;;  %s3182_s23 = smov (!%p31_p0, %s33_s23), %s2433_s20 }
   0x7   : > { %p530_p3 = pnand %p2265_p1, %p529_p2  ;;  %p35_p4 = scmp.ge.s32.totalorder %s3182_s23, 2 }
   0x8   : > { %s2266_s24 = sshll.u32 (!%p530_p3), %s2425_s18, 1  ;;  %p733_p5 = scmp.lt.s32.totalorder (!%p530_p3), %s2425_s18, 1 }
   0x9   : > { %s3184_s23 = smov (%p35_p4, %s3182_s23), 0  ;;  %533 = sbr.rel (%p530_p3) target bundleno = 847 (0x34f), region = 64 }
   0xa   : > { %s634_s25 = sadd.s32 (!%p530_p3), %s2421_s17, %s2266_s24  ;;  %p2332_p7 = scmp.ne.s32.totalorder (!%p530_p3), %s2421_s17, 0 }
   0xb   : > { %s2267_s26 = sshll.u32 (!%p530_p3), %s634_s25, 2 }
   0xc   : > { %p636_p6 = scmp.lt.s32.totalorder (!%p530_p3), %s2267_s26, 15 }
   0xe   : > { %s3186_s18 = smov (!%p733_p5, %s2425_s18), 1  ;;  %s3188_s26 = smov (!%p636_p6, %s2267_s26), 15  ;;  %vm1018_vm0 = vcmask 1043456   ;;  %vm1015_vm1 = vcmask 949248   ;;  %vm1453_vm2 = vcmask 818176   ;;  %vm1962_vm3 = vcmask 1041408  }
   0xf   : > { %s2291_s27 = sshll.u32 %s3186_s18, 1  ;;  %s2336_s28 = smul.u32 504, %s3188_s26  ;;  %vm1958_vm4 = vcmask 408576   ;;  %vm2064_vm5 = vcmask 1024  }
  0x10   : > { %s2538_s12 = scalar_lea.vmem %s3174_s11, %s2291_s27  ;;  %s2709_s27 = scalar_lea.vmem %s3165_s2, %s3188_s26 }
  0x11   : > { %s2543_s15 = scalar_lea.vmem %s3164_s1, %s2336_s28  ;;  %s2842_s28 = smul.u32 104, %s3188_s26 }
  0x12   : > { %v785_v0 = vld [vmem:[%s2543_s15 + $0x178] sm:$0xff]  ;;  %v800_v1 = vld [vmem:[%s2543_s15 + $0x1f0] sm:$0xf]  ;;  %v799_v3 = vld [vmem:[%s2543_s15 + $0x1e8] sm:$0xff]  ;;  %s2959_s30 = scalar_lea.vmem %s3169_s6, %s3188_s26  ;;  %s3035_s24 = scalar_lea.vmem %s3171_s8, %s3188_s26 }
  0x13   : > { %v784_v2 = vld [vmem:[%s2543_s15 + $0x170] sm:$0xff]  ;;  %1062 = vmatpush.msra.mxu2 %v785_v0  ;;  %2292 = vmatpush.msk.msra.mxu3 %vm1018_vm0, %v800_v1  ;;  %v769_v4 = vld [vmem:[%s2543_s15 + $0xf8] sm:$0xff]  ;;  %v783_v5 = vld [vmem:[%s2543_s15 + $0x168] sm:$0xff]  ;;  %s2853_s13 = scalar_lea.vmem %s3166_s3, %s2842_s28  ;;  %s2928_s25 = scalar_lea.vmem %s3168_s5, %s2842_s28 }
  0x14   : > { %1042 = vmatpush.msra.mxu1 %v769_v4  ;;  %v798_v6 = vld [vmem:[%s2543_s15 + $0x1e0] sm:$0xff]  ;;  %v753_v7 = vld [vmem:[%s2543_s15 + $0x78] sm:$0xff]  ;;  %v768_v8 = vld [vmem:[%s2543_s15 + $0xf0] sm:$0xff]  ;;  %s3004_s16 = scalar_lea.vmem %s3170_s7, %s2842_s28 }
  0x15   : > { %1063 = vmatpush.msra.mxu2 %v784_v2  ;;  %1084 = vmatpush.msra.mxu3 %v799_v3  ;;  %v752_v9 = vld [vmem:[%s2543_s15 + $0x70] sm:$0xff]  ;;  %v782_v10 = vld [vmem:[%s2543_s15 + $0x160] sm:$0xff]  ;;  %v797_v11 = vld [vmem:[%s2543_s15 + $0x1d8] sm:$0xff] }
  0x16   : > { %1022 = vmatpush.msra.mxu0 %v753_v7  ;;  %1043 = vmatpush.msra.mxu1 %v768_v8  ;;  %v767_v12 = vld [vmem:[%s2543_s15 + $0xe8] sm:$0xff]  ;;  %v766_v14 = vld [vmem:[%s2543_s15 + $0xe0] sm:$0xff]  ;;  %v781_v15 = vld [vmem:[%s2543_s15 + $0x158] sm:$0xff] }
  0x17   : > { %1064 = vmatpush.msra.mxu2 %v783_v5  ;;  %1085 = vmatpush.msra.mxu3 %v798_v6  ;;  %v751_v13 = vld [vmem:[%s2543_s15 + $0x68] sm:$0xff]  ;;  %v796_v16 = vld [vmem:[%s2543_s15 + $0x1d0] sm:$0xff]  ;;  %v750_v17 = vld [vmem:[%s2543_s15 + $0x60] sm:$0xff] }
  0x18   : > { %1023 = vmatpush.msra.mxu0 %v752_v9  ;;  %1044 = vmatpush.msra.mxu1 %v767_v12  ;;  %v765_v18 = vld [vmem:[%s2543_s15 + $0xd8] sm:$0xff]  ;;  %v780_v19 = vld [vmem:[%s2543_s15 + $0x150] sm:$0xff]  ;;  %v795_v20 = vld [vmem:[%s2543_s15 + $0x1c8] sm:$0xff] }
  0x19   : > { %1065 = vmatpush.msra.mxu2 %v782_v10  ;;  %1086 = vmatpush.msra.mxu3 %v797_v11  ;;  %v749_v21 = vld [vmem:[%s2543_s15 + $0x58] sm:$0xff]  ;;  %v764_v22 = vld [vmem:[%s2543_s15 + $0xd0] sm:$0xff]  ;;  %v779_v23 = vld [vmem:[%s2543_s15 + $0x148] sm:$0xff] }
  0x1a   : > { %1024 = vmatpush.msra.mxu0 %v751_v13  ;;  %1045 = vmatpush.msra.mxu1 %v766_v14  ;;  %v794_v24 = vld [vmem:[%s2543_s15 + $0x1c0] sm:$0xff]  ;;  %v748_v25 = vld [vmem:[%s2543_s15 + $0x50] sm:$0xff]  ;;  %v763_v26 = vld [vmem:[%s2543_s15 + $0xc8] sm:$0xff] }
  0x1b   : > { %1066 = vmatpush.msra.mxu2 %v781_v15  ;;  %1087 = vmatpush.msra.mxu3 %v796_v16  ;;  %v778_v27 = vld [vmem:[%s2543_s15 + $0x140] sm:$0xff]  ;;  %v793_v28 = vld [vmem:[%s2543_s15 + $0x1b8] sm:$0xff]  ;;  %v747_v29 = vld [vmem:[%s2543_s15 + $0x48] sm:$0xff] }
  0x1c   : > { %1025 = vmatpush.msra.mxu0 %v750_v17  ;;  %1046 = vmatpush.msra.mxu1 %v765_v18  ;;  %v762_v30 = vld [vmem:[%s2543_s15 + $0xc0] sm:$0xff]  ;;  %v777_v31 = vld [vmem:[%s2543_s15 + $0x138] sm:$0xff]  ;;  %v792_v32 = vld [vmem:[%s2543_s15 + $0x1b0] sm:$0xff] }
  0x1d   : > { %1067 = vmatpush.msra.mxu2 %v780_v19  ;;  %1088 = vmatpush.msra.mxu3 %v795_v20  ;;  %v746_v33 = vld [vmem:[%s2543_s15 + $0x40] sm:$0xff]  ;;  %v761_v34 = vld [vmem:[%s2543_s15 + $0xb8] sm:$0xff]  ;;  %v776_v35 = vld [vmem:[%s2543_s15 + $0x130] sm:$0xff] }
  0x1e   : > { %1026 = vmatpush.msra.mxu0 %v749_v21  ;;  %1047 = vmatpush.msra.mxu1 %v764_v22  ;;  %v791_v36 = vld [vmem:[%s2543_s15 + $0x1a8] sm:$0xff]  ;;  %v745_v37 = vld [vmem:[%s2543_s15 + $0x38] sm:$0xff]  ;;  %v760_v38 = vld [vmem:[%s2543_s15 + $0xb0] sm:$0xff] }
  0x1f   : > { %1068 = vmatpush.msra.mxu2 %v779_v23  ;;  %1089 = vmatpush.msra.mxu3 %v794_v24  ;;  %v775_v39 = vld [vmem:[%s2543_s15 + $0x128] sm:$0xff]  ;;  %v790_v40 = vld [vmem:[%s2543_s15 + $0x1a0] sm:$0xff]  ;;  %v744_v41 = vld [vmem:[%s2543_s15 + $0x30] sm:$0xff] }
  0x20   : > { %1027 = vmatpush.msra.mxu0 %v748_v25  ;;  %1048 = vmatpush.msra.mxu1 %v763_v26  ;;  %v759_v42 = vld [vmem:[%s2543_s15 + $0xa8] sm:$0xff]  ;;  %v774_v43 = vld [vmem:[%s2543_s15 + $0x120] sm:$0xff]  ;;  %v789_v44 = vld [vmem:[%s2543_s15 + $0x198] sm:$0xff] }
  0x21   : > { %1069 = vmatpush.msra.mxu2 %v778_v27  ;;  %1090 = vmatpush.msra.mxu3 %v793_v28  ;;  %v743_v45 = vld [vmem:[%s2543_s15 + $0x28] sm:$0xff]  ;;  %v758_v46 = vld [vmem:[%s2543_s15 + $0xa0] sm:$0xff]  ;;  %v773_v47 = vld [vmem:[%s2543_s15 + $0x118] sm:$0xff] }
  0x22   : > { %1028 = vmatpush.msra.mxu0 %v747_v29  ;;  %1049 = vmatpush.msra.mxu1 %v762_v30  ;;  %v788_v48 = vld [vmem:[%s2543_s15 + $0x190] sm:$0xff]  ;;  %v742_v49 = vld [vmem:[%s2543_s15 + $0x20] sm:$0xff]  ;;  %v757_v50 = vld [vmem:[%s2543_s15 + $0x98] sm:$0xff] }
  0x23   : > { %1070 = vmatpush.msra.mxu2 %v777_v31  ;;  %1091 = vmatpush.msra.mxu3 %v792_v32  ;;  %v772_v51 = vld [vmem:[%s2543_s15 + $0x110] sm:$0xff]  ;;  %v787_v52 = vld [vmem:[%s2543_s15 + $0x188] sm:$0xff]  ;;  %v741_v53 = vld [vmem:[%s2543_s15 + $0x18] sm:$0xff] }
  0x24   : > { %1029 = vmatpush.msra.mxu0 %v746_v33  ;;  %1050 = vmatpush.msra.mxu1 %v761_v34  ;;  %v756_v54 = vld [vmem:[%s2543_s15 + $0x90] sm:$0xff]  ;;  %v771_v55 = vld [vmem:[%s2543_s15 + $0x108] sm:$0xff]  ;;  %v786_v56 = vld [vmem:[%s2543_s15 + $0x180] sm:$0xff] }
  0x25   : > { %1071 = vmatpush.msra.mxu2 %v776_v35  ;;  %1092 = vmatpush.msra.mxu3 %v791_v36  ;;  %v816_v57 = vld [vmem:[%s2543_s15 + $0x270] sm:$0xff]  ;;  %v770_v59 = vld [vmem:[%s2543_s15 + $0x100] sm:$0xff]  ;;  %v755_v60 = vld [vmem:[%s2543_s15 + $0x88] sm:$0xff] }
  0x26   : > { %1030 = vmatpush.msra.mxu0 %v745_v37  ;;  %1051 = vmatpush.msra.mxu1 %v760_v38  ;;  %v740_v58 = vld [vmem:[%s2543_s15 + $0x10] sm:$0xff]  ;;  %v815_v61 = vld [vmem:[%s2543_s15 + $0x268] sm:$0xff]  ;;  %v754_v0 = vld [vmem:[%s2543_s15 + $0x80] sm:$0xff] }
  0x27   : > { %1072 = vmatpush.msra.mxu2 %v775_v39  ;;  %1093 = vmatpush.msra.mxu3 %v790_v40  ;;  %v863_v62 = vld [vmem:[%s2543_s15 + $0x3e8] sm:$0xf]  ;;  %v814_v1 = vld [vmem:[%s2543_s15 + $0x260] sm:$0xff]  ;;  %v848_v3 = vld [vmem:[%s2543_s15 + $0x370] sm:$0xff] }
  0x28   : > { %1031 = vmatpush.msra.mxu0 %v744_v41  ;;  %1052 = vmatpush.msra.mxu1 %v759_v42  ;;  %v739_v63 = vld [vmem:[%s2543_s15 + $0x8] sm:$0xff]  ;;  %v862_v2 = vld [vmem:[%s2543_s15 + $0x3e0] sm:$0xff]  ;;  %v813_v5 = vld [vmem:[%s2543_s15 + $0x258] sm:$0xff] }
  0x29   : > { %1073 = vmatpush.msra.mxu2 %v774_v43  ;;  %1094 = vmatpush.msra.mxu3 %v789_v44  ;;  %v738_v4 = vld [vmem:[%s2543_s15] sm:$0xff]  ;;  %v861_v6 = vld [vmem:[%s2543_s15 + $0x3d8] sm:$0xff]  ;;  %v832_v7 = vld [vmem:[%s2543_s15 + $0x2f0] sm:$0xff] }
  0x2a   : > { %1032 = vmatpush.msra.mxu0 %v743_v45  ;;  %1053 = vmatpush.msra.mxu1 %v758_v46  ;;  %v847_v8 = vld [vmem:[%s2543_s15 + $0x368] sm:$0xff]  ;;  %v2623_v9 = vld [vmem:[%s3163_s0] sm:$0xff]  ;;  %v812_v10 = vld [vmem:[%s2543_s15 + $0x250] sm:$0xff] }
  0x2b   : > { %1074 = vmatpush.msra.mxu2 %v773_v47  ;;  %1095 = vmatpush.msra.mxu3 %v788_v48  ;;  %v860_v11 = vld [vmem:[%s2543_s15 + $0x3d0] sm:$0xff]  ;;  %1007 = vst [vmem:[#allocation1] ss:$4 sm:$0xff] %v2623_v9  ;;  %v831_v12 = vld [vmem:[%s2543_s15 + $0x2e8] sm:$0xff]  ;;  %v846_v13 = vld [vmem:[%s2543_s15 + $0x360] sm:$0xff] }
  0x2c   : > { %1033 = vmatpush.msra.mxu0 %v742_v49  ;;  %1054 = vmatpush.msra.mxu1 %v757_v50  ;;  %v811_v14 = vld [vmem:[%s2543_s15 + $0x248] sm:$0xff]  ;;  %v830_v16 = vld [vmem:[%s2543_s15 + $0x2e0] sm:$0xff]  ;;  %v845_v17 = vld [vmem:[%s2543_s15 + $0x358] sm:$0xff] }
  0x2d   : > { %1075 = vmatpush.msra.mxu2 %v772_v51  ;;  %1096 = vmatpush.msra.mxu3 %v787_v52  ;;  %v859_v15 = vld [vmem:[%s2543_s15 + $0x3c8] sm:$0xff]  ;;  %v810_v18 = vld [vmem:[%s2543_s15 + $0x240] sm:$0xff]  ;;  %v809_v20 = vld [vmem:[%s2543_s15 + $0x238] sm:$0xff] }
  0x2e   : > { %1034 = vmatpush.msra.mxu0 %v741_v53  ;;  %1055 = vmatpush.msra.mxu1 %v756_v54  ;;  %v858_v19 = vld [vmem:[%s2543_s15 + $0x3c0] sm:$0xff]  ;;  %v829_v21 = vld [vmem:[%s2543_s15 + $0x2d8] sm:$0xff]  ;;  %v844_v22 = vld [vmem:[%s2543_s15 + $0x350] sm:$0xff] }
  0x2f   : > { %1076 = vmatpush.msra.mxu2 %v771_v55  ;;  %1097 = vmatpush.msra.mxu3 %v786_v56  ;;  %v857_v23 = vld [vmem:[%s2543_s15 + $0x3b8] sm:$0xff]  ;;  %v808_v24 = vld [vmem:[%s2543_s15 + $0x230] sm:$0xff]  ;;  %v843_v26 = vld [vmem:[%s2543_s15 + $0x348] sm:$0xff] }
  0x30   : > { %1035 = vmatpush.msra.mxu0 %v740_v58  ;;  %1056 = vmatpush.msra.mxu1 %v755_v60  ;;  %v828_v25 = vld [vmem:[%s2543_s15 + $0x2d0] sm:$0xff]  ;;  %v827_v32 = vld [vmem:[%s2543_s15 + $0x2c8] sm:$0xff]  ;;  %v842_v33 = vld [vmem:[%s2543_s15 + $0x340] sm:$0xff] }
  0x31   : > { %1115 = vmatpush.msrb.mxu3 %v816_v57  ;;  %1077 = vmatpush.msra.mxu2 %v770_v59  ;;  %v856_v27 = vld [vmem:[%s2543_s15 + $0x3b0] sm:$0xff]  ;;  %v807_v34 = vld [vmem:[%s2543_s15 + $0x228] sm:$0xff]  ;;  %v826_v36 = vld [vmem:[%s2543_s15 + $0x2c0] sm:$0xff] }
  0x32   : > { %1036 = vmatpush.msra.mxu0 %v739_v63  ;;  %1057 = vmatpush.msra.mxu1 %v754_v0  ;;  %v1011_v28 = vld.sshfl [vmem:[#allocation1 + $0x18] sm:$0xff pattern:$0x73625140]  ;;  %v2644_v29 = vld.sshfl [vmem:[#allocation1 + $0x10] sm:$0xff pattern:$0x73625140] }
  0x33   : > { %1116 = vmatpush.msrb.mxu3 %v815_v61  ;;  %2294 = vmatpush.msk.msrb.mxu2 %vm1018_vm0, %v863_v62  ;;  %v2646_v30 = vld.sshfl [vmem:[#allocation1] sm:$0xff pattern:$0x73625140]  ;;  %v2648_v31 = vld.sshfl [vmem:[#allocation1 + $0x8] sm:$0xff pattern:$0x73625140] }
  0x34   : > { %1155 = vmatpush.msrb.mxu1 %v848_v3  ;;  %1037 = vmatpush.msra.mxu0 %v738_v4  ;;  %1102 = vst [vmem:[#allocation1] ss:$4 sm:$0xff] %v2623_v9  ;;  %v855_v35 = vld [vmem:[%s2543_s15 + $0x3a8] sm:$0xff]  ;;  %v841_v37 = vld [vmem:[%s2543_s15 + $0x338] sm:$0xff]  ;;  %v806_v38 = vld [vmem:[%s2543_s15 + $0x220] sm:$0xff] }
  0x35   : > { %1117 = vmatpush.msrb.mxu3 %v814_v1  ;;  %1177 = vmatpush.msrb.mxu2 %v862_v2  ;;  %v854_v39 = vld [vmem:[%s2543_s15 + $0x3a0] sm:$0xff]  ;;  %v805_v40 = vld [vmem:[%s2543_s15 + $0x218] sm:$0xff]  ;;  %v840_v42 = vld [vmem:[%s2543_s15 + $0x330] sm:$0xff] }
  0x36   : > { %1135 = vmatpush.msrb.mxu0 %v832_v7  ;;  %1156 = vmatpush.msrb.mxu1 %v847_v8  ;;  %v825_v41 = vld [vmem:[%s2543_s15 + $0x2b8] sm:$0xff]  ;;  %v804_v44 = vld [vmem:[%s2543_s15 + $0x210] sm:$0xff]  ;;  %v839_v46 = vld [vmem:[%s2543_s15 + $0x328] sm:$0xff] }
  0x37   : > { %1118 = vmatpush.msrb.mxu3 %v813_v5  ;;  %1178 = vmatpush.msrb.mxu2 %v861_v6  ;;  %v853_v43 = vld [vmem:[%s2543_s15 + $0x398] sm:$0xff]  ;;  %v824_v45 = vld [vmem:[%s2543_s15 + $0x2b0] sm:$0xff]  ;;  %v823_v48 = vld [vmem:[%s2543_s15 + $0x2a8] sm:$0xff] }
  0x38   : > { %1136 = vmatpush.msrb.mxu0 %v831_v12  ;;  %1157 = vmatpush.msrb.mxu1 %v846_v13  ;;  %v852_v47 = vld [vmem:[%s2543_s15 + $0x390] sm:$0xff]  ;;  %v803_v53 = vld [vmem:[%s2543_s15 + $0x208] sm:$0xff]  ;;  %v838_v54 = vld [vmem:[%s2543_s15 + $0x320] sm:$0xff] }
  0x39   : > { %1119 = vmatpush.msrb.mxu3 %v812_v10  ;;  %1179 = vmatpush.msrb.mxu2 %v860_v11  ;;  %v851_v55 = vld [vmem:[%s2543_s15 + $0x388] sm:$0xff]  ;;  %v822_v56 = vld [vmem:[%s2543_s15 + $0x2a0] sm:$0xff]  ;;  %v837_v58 = vld [vmem:[%s2543_s15 + $0x318] sm:$0xff] }
  0x3a   : > { %1137 = vmatpush.msrb.mxu0 %v830_v16  ;;  %1158 = vmatpush.msrb.mxu1 %v845_v17  ;;  %v802_v57 = vld [vmem:[%s2543_s15 + $0x200] sm:$0xff]  ;;  %v821_v60 = vld [vmem:[%s2543_s15 + $0x298] sm:$0xff]  ;;  %v836_v62 = vld [vmem:[%s2543_s15 + $0x310] sm:$0xff] }
  0x3b   : > { %1120 = vmatpush.msrb.mxu3 %v811_v14  ;;  %1180 = vmatpush.msrb.mxu2 %v859_v15  ;;  %v1103_v49 = vld.sshfl [vmem:[#allocation1] sm:$0xff pattern:$0x73625140]  ;;  %v2668_v50 = vld.sshfl [vmem:[#allocation1 + $0x18] sm:$0xff pattern:$0x73625140] }
  0x3c   : > { %1138 = vmatpush.msrb.mxu0 %v829_v21  ;;  %1159 = vmatpush.msrb.mxu1 %v844_v22  ;;  %v2670_v51 = vld.sshfl [vmem:[#allocation1 + $0x8] sm:$0xff pattern:$0x73625140]  ;;  %v2672_v52 = vld.sshfl [vmem:[#allocation1 + $0x10] sm:$0xff pattern:$0x73625140] }
  0x3d   : > { %1121 = vmatpush.msrb.mxu3 %v810_v18  ;;  %1181 = vmatpush.msrb.mxu2 %v858_v19  ;;  %1195 = vst [vmem:[#allocation1] ss:$4 sm:$0xff] %v2623_v9  ;;  %v850_v59 = vld [vmem:[%s2543_s15 + $0x380] sm:$0xff]  ;;  %v801_v61 = vld [vmem:[%s2543_s15 + $0x1f8] sm:$0xff]  ;;  %v879_v0 = vld [vmem:[%s2543_s15 + $0x468] sm:$0xff] }
  0x3e   : > { %1139 = vmatpush.msrb.mxu0 %v828_v25  ;;  %1160 = vmatpush.msrb.mxu1 %v843_v26  ;;  %v849_v63 = vld [vmem:[%s2543_s15 + $0x378] sm:$0xff]  ;;  %v820_v1 = vld [vmem:[%s2543_s15 + $0x290] sm:$0xff]  ;;  %v835_v2 = vld [vmem:[%s2543_s15 + $0x308] sm:$0xff] }
  0x3f   : > { %1122 = vmatpush.msrb.mxu3 %v809_v20  ;;  %1182 = vmatpush.msrb.mxu2 %v857_v23  ;;  %v895_v3 = vld [vmem:[%s2543_s15 + $0x4e8] sm:$0xff]  ;;  %v878_v4 = vld [vmem:[%s2543_s15 + $0x460] sm:$0xff]  ;;  %v877_v7 = vld [vmem:[%s2543_s15 + $0x458] sm:$0xff] }
  0x40   : > { %1140 = vmatpush.msrb.mxu0 %v827_v32  ;;  %1161 = vmatpush.msrb.mxu1 %v842_v33  ;;  %v819_v5 = vld [vmem:[%s2543_s15 + $0x288] sm:$0xff]  ;;  %v834_v6 = vld [vmem:[%s2543_s15 + $0x300] sm:$0xff]  ;;  %v833_v11 = vld [vmem:[%s2543_s15 + $0x2f8] sm:$0xff] }
  0x41   : > { %1123 = vmatpush.msrb.mxu3 %v808_v24  ;;  %1183 = vmatpush.msrb.mxu2 %v856_v27  ;;  %v894_v8 = vld [vmem:[%s2543_s15 + $0x4e0] sm:$0xff]  ;;  %v893_v12 = vld [vmem:[%s2543_s15 + $0x4d8] sm:$0xff]  ;;  %v876_v13 = vld [vmem:[%s2543_s15 + $0x450] sm:$0xff] }
  0x42   : > { %1141 = vmatpush.msrb.mxu0 %v826_v36  ;;  %1162 = vmatpush.msrb.mxu1 %v841_v37  ;;  %v818_v10 = vld [vmem:[%s2543_s15 + $0x280] sm:$0xff]  ;;  %v817_v15 = vld [vmem:[%s2543_s15 + $0x278] sm:$0xff]  ;;  %v892_v16 = vld [vmem:[%s2543_s15 + $0x4d0] sm:$0xff] }
  0x43   : > { %1124 = vmatpush.msrb.mxu3 %v807_v34  ;;  %1184 = vmatpush.msrb.mxu2 %v855_v35  ;;  %v926_v14 = vld [vmem:[%s2543_s15 + $0x5e0] sm:$0xf]  ;;  %v875_v17 = vld [vmem:[%s2543_s15 + $0x448] sm:$0xff]  ;;  %v925_v18 = vld [vmem:[%s2543_s15 + $0x5d8] sm:$0xff] }
  0x44   : > { %1142 = vmatpush.msrb.mxu0 %v825_v41  ;;  %1163 = vmatpush.msrb.mxu1 %v840_v42  ;;  %v891_v19 = vld [vmem:[%s2543_s15 + $0x4c8] sm:$0xff]  ;;  %v874_v20 = vld [vmem:[%s2543_s15 + $0x440] sm:$0xff]  ;;  %v924_v21 = vld [vmem:[%s2543_s15 + $0x5d0] sm:$0xff] }
  0x45   : > { %1125 = vmatpush.msrb.mxu3 %v806_v38  ;;  %1185 = vmatpush.msrb.mxu2 %v854_v39  ;;  %v890_v22 = vld [vmem:[%s2543_s15 + $0x4c0] sm:$0xff]  ;;  %v873_v23 = vld [vmem:[%s2543_s15 + $0x438] sm:$0xff]  ;;  %v911_v24 = vld [vmem:[%s2543_s15 + $0x568] sm:$0xff] }
  0x46   : > { %2293 = vmatmul.msk.f32.vlgmr.msra.gmra.mxu3 %vm1015_vm1, %v1011_v28  ;;  %1143 = vmatpush.msrb.mxu0 %v824_v45  ;;  %v923_v25 = vld [vmem:[%s2543_s15 + $0x5c8] sm:$0xff]  ;;  %v889_v26 = vld [vmem:[%s2543_s15 + $0x4b8] sm:$0xff]  ;;  %v872_v27 = vld [vmem:[%s2543_s15 + $0x430] sm:$0xff] }
  0x47   : > { %1126 = vmatpush.msrb.mxu3 %v805_v40  ;;  %1186 = vmatpush.msrb.mxu2 %v853_v43  ;;  %v910_v28 = vld [vmem:[%s2543_s15 + $0x560] sm:$0xff]  ;;  %v909_v32 = vld [vmem:[%s2543_s15 + $0x558] sm:$0xff]  ;;  %v887_v34 = vld [vmem:[%s2543_s15 + $0x4a8] sm:$0xff] }
  0x48   : > { %1164 = vmatpush.msrb.mxu1 %v839_v46  ;;  %1144 = vmatpush.msrb.mxu0 %v823_v48  ;;  %v921_v33 = vld [vmem:[%s2543_s15 + $0x5b8] sm:$0xff]  ;;  %v870_v35 = vld [vmem:[%s2543_s15 + $0x420] sm:$0xff]  ;;  %v908_v36 = vld [vmem:[%s2543_s15 + $0x550] sm:$0xff] }
  0x49   : > { %1127 = vmatpush.msrb.mxu3 %v804_v44  ;;  %1187 = vmatpush.msrb.mxu2 %v852_v47  ;;  %v920_v37 = vld [vmem:[%s2543_s15 + $0x5b0] sm:$0xff]  ;;  %v886_v38 = vld [vmem:[%s2543_s15 + $0x4a0] sm:$0xff]  ;;  %v869_v39 = vld [vmem:[%s2543_s15 + $0x418] sm:$0xff] }
  0x4a   : > { %1165 = vmatpush.msrb.mxu1 %v838_v54  ;;  %1145 = vmatpush.msrb.mxu0 %v822_v56  ;;  %v907_v40 = vld [vmem:[%s2543_s15 + $0x548] sm:$0xff]  ;;  %v885_v42 = vld [vmem:[%s2543_s15 + $0x498] sm:$0xff]  ;;  %v868_v43 = vld [vmem:[%s2543_s15 + $0x410] sm:$0xff] }
  0x4b   : > { %1128 = vmatpush.msrb.mxu3 %v803_v53  ;;  %1188 = vmatpush.msrb.mxu2 %v851_v55  ;;  %v919_v41 = vld [vmem:[%s2543_s15 + $0x5a8] sm:$0xff]  ;;  %v906_v44 = vld [vmem:[%s2543_s15 + $0x540] sm:$0xff]  ;;  %v884_v47 = vld [vmem:[%s2543_s15 + $0x490] sm:$0xff] }
  0x4c   : > { %1166 = vmatpush.msrb.mxu1 %v837_v58  ;;  %1146 = vmatpush.msrb.mxu0 %v821_v60  ;;  %v918_v45 = vld [vmem:[%s2543_s15 + $0x5a0] sm:$0xff]  ;;  %v867_v46 = vld [vmem:[%s2543_s15 + $0x408] sm:$0xff]  ;;  %v905_v48 = vld [vmem:[%s2543_s15 + $0x538] sm:$0xff] }
  0x4d   : > { %1129 = vmatpush.msrb.mxu3 %v802_v57  ;;  %1189 = vmatpush.msrb.mxu2 %v850_v59  ;;  %v916_v53 = vld [vmem:[%s2543_s15 + $0x590] sm:$0xff]  ;;  %v865_v54 = vld [vmem:[%s2543_s15 + $0x3f8] sm:$0xff]  ;;  %v882_v55 = vld [vmem:[%s2543_s15 + $0x480] sm:$0xff] }
  0x4e   : > { %1078 = vmatmul.f32.vlgmr.msra.gmra.mxu2 %v2644_v29  ;;  %1167 = vmatpush.msrb.mxu1 %v836_v62  ;;  %v922_v29 = vld [vmem:[%s2543_s15 + $0x5c0] sm:$0xff]  ;;  %v903_v56 = vld [vmem:[%s2543_s15 + $0x528] sm:$0xff]  ;;  %v2759_v58 = vld.sshfl [vmem:[#allocation1 + $0x10] sm:$0xff pattern:$0x73625140] }
  0x4f   : > { %1130 = vmatpush.msrb.mxu3 %v801_v61  ;;  %1190 = vmatpush.msrb.mxu2 %v849_v63  ;;  %v2757_v57 = vld.sshfl [vmem:[#allocation1] sm:$0xff pattern:$0x73625140]  ;;  %v2761_v59 = vld.sshfl [vmem:[#allocation1 + $0x8] sm:$0xff pattern:$0x73625140] }
  0x50   : > { %1038 = vmatmul.f32.vlgmr.msra.gmra.mxu0 %v2646_v30  ;;  %1131 = vmatmul.f32.vlgmr.msrb.gmra.mxu3 %v1103_v49  ;;  %v888_v30 = vld [vmem:[%s2543_s15 + $0x4b0] sm:$0xff]  ;;  %v917_v49 = vld [vmem:[%s2543_s15 + $0x598] sm:$0xff]  ;;  %v915_v61 = vld [vmem:[%s2543_s15 + $0x588] sm:$0xff] }
  0x51   : > { %1208 = vmatpush.msra.mxu2 %v879_v0  ;;  %1147 = vmatpush.msrb.mxu0 %v820_v1  ;;  %v2763_v60 = vld.sshfl [vmem:[#allocation1 + $0x18] sm:$0xff pattern:$0x73625140]  ;;  %v864_v63 = vld [vmem:[%s2543_s15 + $0x3f0] sm:$0xff]  ;;  %v902_v0 = vld [vmem:[%s2543_s15 + $0x520] sm:$0xff] }
  0x52   : > { %1168 = vmatpush.msrb.mxu1 %v835_v2  ;;  %1228 = vmatpush.msra.mxu3 %v895_v3  ;;  %v881_v62 = vld [vmem:[%s2543_s15 + $0x478] sm:$0xff]  ;;  %1288 = vst [vmem:[#allocation1] ss:$4 sm:$0xff] %v2623_v9  ;;  %v914_v1 = vld [vmem:[%s2543_s15 + $0x580] sm:$0xff]  ;;  %v880_v3 = vld [vmem:[%s2543_s15 + $0x470] sm:$0xff] }
  0x53   : > { %1058 = vmatmul.f32.vlgmr.msra.gmra.mxu1 %v2648_v31  ;;  %1209 = vmatpush.msra.mxu2 %v878_v4  ;;  %v871_v31 = vld [vmem:[%s2543_s15 + $0x428] sm:$0xff]  ;;  %v958_v2 = vld [vmem:[%s2543_s15 + $0x6e0] sm:$0xff]  ;;  %v901_v4 = vld [vmem:[%s2543_s15 + $0x518] sm:$0xff] }
  0x54   : > { %1148 = vmatpush.msrb.mxu0 %v819_v5  ;;  %1169 = vmatpush.msrb.mxu1 %v834_v6  ;;  %v913_v9 = vld [vmem:[%s2543_s15 + $0x578] sm:$0xff]  ;;  %v974_v6 = vld [vmem:[%s2543_s15 + $0x760] sm:$0xff] }
  0x55   : > { %1210 = vmatpush.msra.mxu2 %v877_v7  ;;  %1229 = vmatpush.msra.mxu3 %v894_v8  ;;  %v957_v5 = vld [vmem:[%s2543_s15 + $0x6d8] sm:$0xff]  ;;  %v900_v7 = vld [vmem:[%s2543_s15 + $0x510] sm:$0xff] }
  0x56   : > { %1149 = vmatpush.msrb.mxu0 %v818_v10  ;;  %1170 = vmatpush.msrb.mxu1 %v833_v11  ;;  %v912_v8 = vld [vmem:[%s2543_s15 + $0x570] sm:$0xff]  ;;  %v942_v11 = vld [vmem:[%s2543_s15 + $0x660] sm:$0xff] }
  0x57   : > { %2295 = vmatmul.msk.f32.vlgmr.msrb.gmra.mxu2 %vm1015_vm1, %v2668_v50  ;;  %1230 = vmatpush.msra.mxu3 %v893_v12  ;;  %v866_v50 = vld [vmem:[%s2543_s15 + $0x400] sm:$0xff]  ;;  %v956_v10 = vld [vmem:[%s2543_s15 + $0x6d0] sm:$0xff]  ;;  %v973_v12 = vld [vmem:[%s2543_s15 + $0x758] sm:$0xff] }
  0x58   : > { %1211 = vmatpush.msra.mxu2 %v876_v13  ;;  %2296 = vmatpush.msk.msra.mxu1 %vm1018_vm0, %v926_v14  ;;  %v899_v13 = vld [vmem:[%s2543_s15 + $0x508] sm:$0xff] }
  0x59   : > { %1150 = vmatpush.msrb.mxu0 %v817_v15  ;;  %1231 = vmatpush.msra.mxu3 %v892_v16  ;;  %v955_v14 = vld [vmem:[%s2543_s15 + $0x6c8] sm:$0xff]  ;;  %v941_v15 = vld [vmem:[%s2543_s15 + $0x658] sm:$0xff]  ;;  %v972_v16 = vld [vmem:[%s2543_s15 + $0x750] sm:$0xff] }
  0x5a   : > { %1151 = vmatmul.f32.vlgmr.msrb.gmra.mxu0 %v2670_v51  ;;  %1212 = vmatpush.msra.mxu2 %v875_v17  ;;  %v883_v51 = vld [vmem:[%s2543_s15 + $0x488] sm:$0xff]  ;;  %v898_v17 = vld [vmem:[%s2543_s15 + $0x500] sm:$0xff] }
  0x5b   : > { %1270 = vmatpush.msra.mxu1 %v925_v18  ;;  %1232 = vmatpush.msra.mxu3 %v891_v19  ;;  %v954_v18 = vld [vmem:[%s2543_s15 + $0x6c0] sm:$0xff]  ;;  %v940_v19 = vld [vmem:[%s2543_s15 + $0x650] sm:$0xff] }
  0x5c   : > { %1171 = vmatmul.f32.vlgmr.msrb.gmra.mxu1 %v2672_v52  ;;  %1213 = vmatpush.msra.mxu2 %v874_v20  ;;  %v904_v52 = vld [vmem:[%s2543_s15 + $0x530] sm:$0xff]  ;;  %v971_v20 = vld [vmem:[%s2543_s15 + $0x748] sm:$0xff] }
  0x5d   : > { %1271 = vmatpush.msra.mxu1 %v924_v21  ;;  %1233 = vmatpush.msra.mxu3 %v890_v22  ;;  %v897_v21 = vld [vmem:[%s2543_s15 + $0x4f8] sm:$0xff] }
  0x5e   : > { %1214 = vmatpush.msra.mxu2 %v873_v23  ;;  %1248 = vmatpush.msra.mxu0 %v911_v24  ;;  %v953_v22 = vld [vmem:[%s2543_s15 + $0x6b8] sm:$0xff]  ;;  %v939_v23 = vld [vmem:[%s2543_s15 + $0x648] sm:$0xff]  ;;  %v970_v24 = vld [vmem:[%s2543_s15 + $0x740] sm:$0xff] }
  0x5f   : > { %1272 = vmatpush.msra.mxu1 %v923_v25  ;;  %1234 = vmatpush.msra.mxu3 %v889_v26  ;;  %v896_v25 = vld [vmem:[%s2543_s15 + $0x4f0] sm:$0xff] }
  0x60   : > { %1215 = vmatpush.msra.mxu2 %v872_v27  ;;  %1249 = vmatpush.msra.mxu0 %v910_v28  ;;  %v952_v26 = vld [vmem:[%s2543_s15 + $0x6b0] sm:$0xff]  ;;  %v938_v27 = vld [vmem:[%s2543_s15 + $0x640] sm:$0xff]  ;;  %v969_v28 = vld [vmem:[%s2543_s15 + $0x738] sm:$0xff] }
  0x61   : > { %1273 = vmatpush.msra.mxu1 %v922_v29  ;;  %1235 = vmatpush.msra.mxu3 %v888_v30  ;;  %v989_v29 = vld [vmem:[%s2543_s15 + $0x7d8] sm:$0xf]  ;;  %v951_v30 = vld [vmem:[%s2543_s15 + $0x6a8] sm:$0xff] }
  0x62   : > { %1216 = vmatpush.msra.mxu2 %v871_v31  ;;  %1250 = vmatpush.msra.mxu0 %v909_v32  ;;  %v937_v31 = vld [vmem:[%s2543_s15 + $0x638] sm:$0xff]  ;;  %v968_v32 = vld [vmem:[%s2543_s15 + $0x730] sm:$0xff] }
  0x63   : > { %1274 = vmatpush.msra.mxu1 %v921_v33  ;;  %1236 = vmatpush.msra.mxu3 %v887_v34  ;;  %v988_v33 = vld [vmem:[%s2543_s15 + $0x7d0] sm:$0xff] }
  0x64   : > { %1217 = vmatpush.msra.mxu2 %v870_v35  ;;  %1251 = vmatpush.msra.mxu0 %v908_v36  ;;  %v936_v34 = vld [vmem:[%s2543_s15 + $0x630] sm:$0xff]  ;;  %v950_v35 = vld [vmem:[%s2543_s15 + $0x6a0] sm:$0xff]  ;;  %v967_v36 = vld [vmem:[%s2543_s15 + $0x728] sm:$0xff] }
  0x65   : > { %1275 = vmatpush.msra.mxu1 %v920_v37  ;;  %1237 = vmatpush.msra.mxu3 %v886_v38  ;;  %v987_v37 = vld [vmem:[%s2543_s15 + $0x7c8] sm:$0xff] }
  0x66   : > { %1218 = vmatpush.msra.mxu2 %v869_v39  ;;  %1252 = vmatpush.msra.mxu0 %v907_v40  ;;  %v935_v38 = vld [vmem:[%s2543_s15 + $0x628] sm:$0xff]  ;;  %v949_v39 = vld [vmem:[%s2543_s15 + $0x698] sm:$0xff]  ;;  %v966_v40 = vld [vmem:[%s2543_s15 + $0x720] sm:$0xff] }
  0x67   : > { %1276 = vmatpush.msra.mxu1 %v919_v41  ;;  %1238 = vmatpush.msra.mxu3 %v885_v42  ;;  %v986_v41 = vld [vmem:[%s2543_s15 + $0x7c0] sm:$0xff] }
  0x68   : > { %1219 = vmatpush.msra.mxu2 %v868_v43  ;;  %1253 = vmatpush.msra.mxu0 %v906_v44  ;;  %v934_v42 = vld [vmem:[%s2543_s15 + $0x620] sm:$0xff]  ;;  %v948_v43 = vld [vmem:[%s2543_s15 + $0x690] sm:$0xff]  ;;  %v965_v44 = vld [vmem:[%s2543_s15 + $0x718] sm:$0xff] }
  0x69   : > { %1277 = vmatpush.msra.mxu1 %v918_v45  ;;  %1239 = vmatpush.msra.mxu3 %v884_v47  ;;  %v985_v45 = vld [vmem:[%s2543_s15 + $0x7b8] sm:$0xff]  ;;  %v947_v47 = vld [vmem:[%s2543_s15 + $0x688] sm:$0xff] }
  0x6a   : > { %1220 = vmatpush.msra.mxu2 %v867_v46  ;;  %1254 = vmatpush.msra.mxu0 %v905_v48  ;;  %v933_v46 = vld [vmem:[%s2543_s15 + $0x618] sm:$0xff]  ;;  %v964_v48 = vld [vmem:[%s2543_s15 + $0x710] sm:$0xff] }
  0x6b   : > { %1278 = vmatpush.msra.mxu1 %v917_v49  ;;  %1240 = vmatpush.msra.mxu3 %v883_v51  ;;  %v984_v49 = vld [vmem:[%s2543_s15 + $0x7b0] sm:$0xff]  ;;  %v946_v51 = vld [vmem:[%s2543_s15 + $0x680] sm:$0xff] }
  0x6c   : > { %1221 = vmatpush.msra.mxu2 %v866_v50  ;;  %1255 = vmatpush.msra.mxu0 %v904_v52  ;;  %v932_v50 = vld [vmem:[%s2543_s15 + $0x610] sm:$0xff]  ;;  %v963_v52 = vld [vmem:[%s2543_s15 + $0x708] sm:$0xff] }
  0x6d   : > { %1279 = vmatpush.msra.mxu1 %v916_v53  ;;  %1241 = vmatpush.msra.mxu3 %v882_v55  ;;  %v983_v53 = vld [vmem:[%s2543_s15 + $0x7a8] sm:$0xff]  ;;  %v945_v55 = vld [vmem:[%s2543_s15 + $0x678] sm:$0xff] }
  0x6e   : > { %1222 = vmatpush.msra.mxu2 %v865_v54  ;;  %1256 = vmatpush.msra.mxu0 %v903_v56  ;;  %v931_v54 = vld [vmem:[%s2543_s15 + $0x608] sm:$0xff]  ;;  %v962_v56 = vld [vmem:[%s2543_s15 + $0x700] sm:$0xff] }
  0x6f   : > { %1280 = vmatpush.msra.mxu1 %v915_v61  ;;  %1242 = vmatpush.msra.mxu3 %v881_v62  ;;  %v930_v61 = vld [vmem:[%s2543_s15 + $0x600] sm:$0xff]  ;;  %v961_v62 = vld [vmem:[%s2543_s15 + $0x6f8] sm:$0xff] }
  0x70   : > { %1223 = vmatpush.msra.mxu2 %v864_v63  ;;  %1257 = vmatpush.msra.mxu0 %v902_v0  ;;  %v981_v63 = vld [vmem:[%s2543_s15 + $0x798] sm:$0xff]  ;;  %v943_v0 = vld [vmem:[%s2543_s15 + $0x668] sm:$0xff] }
  0x71   : > { %1281 = vmatpush.msra.mxu1 %v914_v1  ;;  %1243 = vmatpush.msra.mxu3 %v880_v3  ;;  %v929_v1 = vld [vmem:[%s2543_s15 + $0x5f8] sm:$0xff]  ;;  %v1290_v3 = vld.sshfl [vmem:[#allocation1 + $0x8] sm:$0xff pattern:$0x73625140] }
  0x72   : > { %1321 = vmatpush.msrb.mxu2 %v958_v2  ;;  %1258 = vmatpush.msra.mxu0 %v901_v4  ;;  %v960_v2 = vld [vmem:[%s2543_s15 + $0x6f0] sm:$0xff] }
  0x73   : > { %1282 = vmatpush.msra.mxu1 %v913_v9  ;;  %1341 = vmatpush.msrb.mxu3 %v974_v6  ;;  %v928_v4 = vld [vmem:[%s2543_s15 + $0x5f0] sm:$0xff]  ;;  %v959_v9 = vld [vmem:[%s2543_s15 + $0x6e8] sm:$0xff] }
  0x74   : > { %1322 = vmatpush.msrb.mxu2 %v957_v5  ;;  %1259 = vmatpush.msra.mxu0 %v900_v7  ;;  %v1291_v5 = vld.sshfl [vmem:[#allocation1 + $0x10] sm:$0xff pattern:$0x73625140]  ;;  %v927_v6 = vld [vmem:[%s2543_s15 + $0x5e8] sm:$0xff]  ;;  %v978_v7 = vld [vmem:[%s2543_s15 + $0x780] sm:$0xff] }
  0x75   : > { %1283 = vmatpush.msra.mxu1 %v912_v8  ;;  %1342 = vmatpush.msrb.mxu3 %v973_v12  ;;  %v1289_v8 = vld.sshfl [vmem:[#allocation1] sm:$0xff pattern:$0x73625140] }
  0x76   : > { %1323 = vmatpush.msrb.mxu2 %v956_v10  ;;  %1260 = vmatpush.msra.mxu0 %v899_v13  ;;  %v1410_v10 = vld [vmem:[%s2853_s13 + $0xc8] sm:$0xf]  ;;  %v1409_v12 = vld [vmem:[%s2853_s13 + $0xc0] sm:$0xff]  ;;  %v976_v13 = vld [vmem:[%s2543_s15 + $0x770] sm:$0xff] }
  0x77   : > { %1301 = vmatpush.msrb.mxu1 %v942_v11  ;;  %1343 = vmatpush.msrb.mxu3 %v972_v16  ;;  %v977_v11 = vld [vmem:[%s2543_s15 + $0x778] sm:$0xff] }
  0x78   : > { %1324 = vmatpush.msrb.mxu2 %v955_v14  ;;  %1261 = vmatpush.msra.mxu0 %v898_v17  ;;  %v1408_v14 = vld [vmem:[%s2853_s13 + $0xb8] sm:$0xff]  ;;  %v1397_v17 = vld [vmem:[%s2853_s13 + $0x60] sm:$0xf] }
  0x79   : > { %1302 = vmatpush.msrb.mxu1 %v941_v15  ;;  %1344 = vmatpush.msrb.mxu3 %v971_v20  ;;  %v975_v15 = vld [vmem:[%s2543_s15 + $0x768] sm:$0xff]  ;;  %v1292_v16 = vld.sshfl [vmem:[#allocation1 + $0x18] sm:$0xff pattern:$0x73625140] }
  0x7a   : > { %1325 = vmatpush.msrb.mxu2 %v954_v18  ;;  %1262 = vmatpush.msra.mxu0 %v897_v21  ;;  %v1396_v18 = vld [vmem:[%s2853_s13 + $0x58] sm:$0xff]  ;;  %v1394_v20 = vld [vmem:[%s2853_s13 + $0x48] sm:$0xff]  ;;  %v1393_v21 = vld [vmem:[%s2853_s13 + $0x40] sm:$0xff] }
  0x7b   : > { %1303 = vmatpush.msrb.mxu1 %v940_v19  ;;  %1345 = vmatpush.msrb.mxu3 %v970_v24  ;;  %v1395_v19 = vld [vmem:[%s2853_s13 + $0x50] sm:$0xff] }
  0x7c   : > { %1326 = vmatpush.msrb.mxu2 %v953_v22  ;;  %1263 = vmatpush.msra.mxu0 %v896_v25  ;;  %v1392_v22 = vld [vmem:[%s2853_s13 + $0x38] sm:$0xff]  ;;  %v1391_v24 = vld [vmem:[%s2853_s13 + $0x30] sm:$0xff]  ;;  %v1406_v25 = vld [vmem:[%s2853_s13 + $0xa8] sm:$0xff] }
  0x7d   : > { %1304 = vmatpush.msrb.mxu1 %v939_v23  ;;  %1346 = vmatpush.msrb.mxu3 %v969_v28  ;;  %v1407_v23 = vld [vmem:[%s2853_s13 + $0xb0] sm:$0xff]  ;;  %v1389_v28 = vld [vmem:[%s2853_s13 + $0x20] sm:$0xff] }
  0x7e   : > { %1327 = vmatpush.msrb.mxu2 %v952_v26  ;;  %2298 = vmatpush.msk.msrb.mxu0 %vm1018_vm0, %v989_v29  ;;  %v1390_v26 = vld [vmem:[%s2853_s13 + $0x28] sm:$0xff]  ;;  %v1404_v29 = vld [vmem:[%s2853_s13 + $0x98] sm:$0xff] }
  0x7f   : > { %1305 = vmatpush.msrb.mxu1 %v938_v27  ;;  %1347 = vmatpush.msrb.mxu3 %v968_v32  ;;  %v1405_v27 = vld [vmem:[%s2853_s13 + $0xa0] sm:$0xff]  ;;  %v1387_v32 = vld [vmem:[%s2853_s13 + $0x10] sm:$0xff] }
  0x80   : > { %1328 = vmatpush.msrb.mxu2 %v951_v30  ;;  %1363 = vmatpush.msrb.mxu0 %v988_v33  ;;  %v1388_v30 = vld [vmem:[%s2853_s13 + $0x18] sm:$0xff]  ;;  %v1402_v33 = vld [vmem:[%s2853_s13 + $0x88] sm:$0xff] }
  0x81   : > { %1306 = vmatpush.msrb.mxu1 %v937_v31  ;;  %1224 = vmatmul.f32.vlgmr.msra.gmra.mxu2 %v2757_v57  ;;  %v982_v57 = vld [vmem:[%s2543_s15 + $0x7a0] sm:$0xff]  ;;  %v1403_v31 = vld [vmem:[%s2853_s13 + $0x90] sm:$0xff] }
  0x82   : > { %1329 = vmatpush.msrb.mxu2 %v950_v35  ;;  %1348 = vmatpush.msrb.mxu3 %v967_v36  ;;  %v1401_v35 = vld [vmem:[%s2853_s13 + $0x80] sm:$0xff] }
  0x83   : > { %1307 = vmatpush.msrb.mxu1 %v936_v34  ;;  %1364 = vmatpush.msrb.mxu0 %v987_v37  ;;  %v1386_v34 = vld [vmem:[%s2853_s13 + $0x8] sm:$0xff]  ;;  %v1385_v36 = vld [vmem:[%s2853_s13] sm:$0xff]  ;;  %v1400_v37 = vld [vmem:[%s2853_s13 + $0x78] sm:$0xff] }
  0x84   : > { %1244 = vmatmul.f32.vlgmr.msra.gmra.mxu3 %v2761_v59  ;;  %1330 = vmatpush.msrb.mxu2 %v949_v39  ;;  %v944_v59 = vld [vmem:[%s2543_s15 + $0x670] sm:$0xff]  ;;  %v1398_v39 = vld [vmem:[%s2853_s13 + $0x68] sm:$0xff] }
  0x85   : > { %1308 = vmatpush.msrb.mxu1 %v935_v38  ;;  %1349 = vmatpush.msrb.mxu3 %v966_v40  ;;  %v1399_v38 = vld [vmem:[%s2853_s13 + $0x70] sm:$0xff] }
  0x86   : > { %1365 = vmatpush.msrb.mxu0 %v986_v41  ;;  %1331 = vmatpush.msrb.mxu2 %v948_v43  ;;  %v1423_v40 = vld [vmem:[%s2853_s13 + $0x130] sm:$0xf]  ;;  %v1422_v41 = vld [vmem:[%s2853_s13 + $0x128] sm:$0xff]  ;;  %v1420_v43 = vld [vmem:[%s2853_s13 + $0x118] sm:$0xff] }
  0x87   : > { %1309 = vmatpush.msrb.mxu1 %v934_v42  ;;  %1350 = vmatpush.msrb.mxu3 %v965_v44  ;;  %v1421_v42 = vld [vmem:[%s2853_s13 + $0x120] sm:$0xff]  ;;  %v1419_v44 = vld [vmem:[%s2853_s13 + $0x110] sm:$0xff] }
  0x88   : > { %1366 = vmatpush.msrb.mxu0 %v985_v45  ;;  %1332 = vmatpush.msrb.mxu2 %v947_v47  ;;  %v1418_v45 = vld [vmem:[%s2853_s13 + $0x108] sm:$0xff]  ;;  %v2379_v47 = vld [vmem:[%s2709_s27] ss:$0 sm:$0xff] }
  0x89   : > { %1310 = vmatpush.msrb.mxu1 %v933_v46  ;;  %1351 = vmatpush.msrb.mxu3 %v964_v48  ;;  %v1417_v48 = vld [vmem:[%s2853_s13 + $0x100] sm:$0xff] }
  0x8a   : > { %1367 = vmatpush.msrb.mxu0 %v984_v49  ;;  %1333 = vmatpush.msrb.mxu2 %v946_v51 }
  0x8b   : > { %1311 = vmatpush.msrb.mxu1 %v932_v50  ;;  %1352 = vmatpush.msrb.mxu3 %v963_v52  ;;  %v2380_v52 = vld [vmem:[%s2709_s27 + $0x1] ss:$0 sm:$0xff] }
  0x8c   : > { %1368 = vmatpush.msrb.mxu0 %v983_v53  ;;  %1334 = vmatpush.msrb.mxu2 %v945_v55 }
  0x8d   : > { %1312 = vmatpush.msrb.mxu1 %v931_v54  ;;  %1264 = vmatmul.f32.vlgmr.msra.gmra.mxu0 %v2759_v58  ;;  %v980_v58 = vld [vmem:[%s2543_s15 + $0x790] sm:$0xff] }
  0x8e   : > { %1353 = vmatpush.msrb.mxu3 %v962_v56  ;;  %1369 = vmatpush.msrb.mxu0 %v982_v57 }
  0x8f   : > { %2297 = vmatmul.msk.f32.vlgmr.msra.gmra.mxu1 %vm1015_vm1, %v2763_v60  ;;  %1335 = vmatpush.msrb.mxu2 %v944_v59  ;;  %v979_v60 = vld [vmem:[%s2543_s15 + $0x788] sm:$0xff]  ;;  %s2871_s15 = scalar_lea.vmem %s3167_s4, %s3188_s26 }
  0x90   : > { %1313 = vmatpush.msrb.mxu1 %v930_v61  ;;  %1354 = vmatpush.msrb.mxu3 %v961_v62 }
  0x91   : > { %1370 = vmatpush.msrb.mxu0 %v981_v63  ;;  %1336 = vmatpush.msrb.mxu2 %v943_v0 }
  0x92   : > { %1314 = vmatpush.msrb.mxu1 %v929_v1  ;;  %1355 = vmatpush.msrb.mxu3 %v960_v2 }
  0x93   : > { %1371 = vmatpush.msrb.mxu0 %v980_v58  ;;  %1337 = vmatmul.f32.vlgmr.msrb.gmra.mxu2 %v1290_v3 }
  0x94   : > { %1315 = vmatpush.msrb.mxu1 %v928_v4  ;;  %1356 = vmatpush.msrb.mxu3 %v959_v9  ;;  %v1416_v4 = vld [vmem:[%s2853_s13 + $0xf8] sm:$0xff] }
  0x95   : > { %1372 = vmatpush.msrb.mxu0 %v979_v60  ;;  %1357 = vmatmul.f32.vlgmr.msrb.gmra.mxu3 %v1291_v5  ;;  %v1436_v9 = vld [vmem:[%s2853_s13 + $0x198] sm:$0xf]  ;;  %v1415_v60 = vld [vmem:[%s2853_s13 + $0xf0] sm:$0xff] }
  0x96   : > { %1316 = vmatpush.msrb.mxu1 %v927_v6  ;;  %2304 = vmatpush.msk.msra.mxu2 %vm1018_vm0, %v1423_v40  ;;  %v1435_v5 = vld [vmem:[%s2853_s13 + $0x190] sm:$0xff]  ;;  %v1414_v6 = vld [vmem:[%s2853_s13 + $0xe8] sm:$0xff] }
  0x97   : > { %1373 = vmatpush.msrb.mxu0 %v978_v7  ;;  %1317 = vmatmul.f32.vlgmr.msrb.gmra.mxu1 %v1289_v8  ;;  %v1434_v7 = vld [vmem:[%s2853_s13 + $0x188] sm:$0xff]  ;;  %v1413_v8 = vld [vmem:[%s2853_s13 + $0xe0] sm:$0xff]  ;;  %v1568_v40 = vld [vmem:[%s2928_s25 + $0x30] sm:$0xff] }
  0x98   : > { %2302 = vmatpush.msk.msra.mxu1 %vm1018_vm0, %v1410_v10  ;;  %1516 = vmatpush.msra.mxu2 %v1422_v41  ;;  %v1433_v10 = vld [vmem:[%s2853_s13 + $0x180] sm:$0xff] }
  0x99   : > { %1374 = vmatpush.msrb.mxu0 %v977_v11  ;;  %2306 = vmatpush.msk.msra.mxu3 %vm1018_vm0, %v1436_v9  ;;  %v1412_v11 = vld [vmem:[%s2853_s13 + $0xd8] sm:$0xff]  ;;  %v1600_v9 = vld [vmem:[%s2928_s25 + $0x130] sm:$0xf] }
  0x9a   : > { %1490 = vmatpush.msra.mxu1 %v1409_v12  ;;  %1517 = vmatpush.msra.mxu2 %v1421_v42  ;;  %v1432_v12 = vld [vmem:[%s2853_s13 + $0x178] sm:$0xff] }
  0x9b   : > { %1375 = vmatpush.msrb.mxu0 %v976_v13  ;;  %1542 = vmatpush.msra.mxu3 %v1435_v5  ;;  %v1411_v13 = vld [vmem:[%s2853_s13 + $0xd0] sm:$0xff]  ;;  %v1581_v42 = vld [vmem:[%s2928_s25 + $0x98] sm:$0xff]  ;;  %v1598_v5 = vld [vmem:[%s2928_s25 + $0x120] sm:$0xff] }
  0x9c   : > { %1491 = vmatpush.msra.mxu1 %v1408_v14  ;;  %1518 = vmatpush.msra.mxu2 %v1420_v43  ;;  %v1431_v14 = vld [vmem:[%s2853_s13 + $0x170] sm:$0xff] }
  0x9d   : > { %1376 = vmatpush.msrb.mxu0 %v975_v15  ;;  %1543 = vmatpush.msra.mxu3 %v1434_v7  ;;  %v1430_v15 = vld [vmem:[%s2853_s13 + $0x168] sm:$0xff]  ;;  %v1612_v7 = vld [vmem:[%s2928_s25 + $0x190] sm:$0xff] }
  0x9e   : > { %2299 = vmatmul.msk.f32.vlgmr.msrb.gmra.mxu0 %vm1015_vm1, %v1292_v16  ;;  %1492 = vmatpush.msra.mxu1 %v1407_v23  ;;  %v1429_v16 = vld [vmem:[%s2853_s13 + $0x160] sm:$0xff]  ;;  %v1573_v23 = vld [vmem:[%s2928_s25 + $0x58] sm:$0xff] }
  0x9f   : > { %2300 = vmatpush.msk.msra.mxu0 %vm1018_vm0, %v1397_v17  ;;  %1519 = vmatpush.msra.mxu2 %v1419_v44  ;;  %v1428_v17 = vld [vmem:[%s2853_s13 + $0x158] sm:$0xff]  ;;  %v1567_v44 = vld [vmem:[%s2928_s25 + $0x28] sm:$0xff] }
  0xa0   : > { %1493 = vmatpush.msra.mxu1 %v1406_v25  ;;  %1544 = vmatpush.msra.mxu3 %v1433_v10  ;;  %v1587_v25 = vld [vmem:[%s2928_s25 + $0xc8] sm:$0xf] }
  0xa1   : > { %1464 = vmatpush.msra.mxu0 %v1396_v18  ;;  %1520 = vmatpush.msra.mxu2 %v1418_v45  ;;  %v1427_v18 = vld [vmem:[%s2853_s13 + $0x150] sm:$0xff]  ;;  %v1611_v10 = vld [vmem:[%s2928_s25 + $0x188] sm:$0xff] }
  0xa2   : > { %1494 = vmatpush.msra.mxu1 %v1405_v27  ;;  %1545 = vmatpush.msra.mxu3 %v1432_v12  ;;  %v1572_v27 = vld [vmem:[%s2928_s25 + $0x50] sm:$0xff]  ;;  %v1595_v12 = vld [vmem:[%s2928_s25 + $0x108] sm:$0xff] }
  0xa3   : > { %1465 = vmatpush.msra.mxu0 %v1395_v19  ;;  %1521 = vmatpush.msra.mxu2 %v1417_v48  ;;  %v1426_v19 = vld [vmem:[%s2853_s13 + $0x148] sm:$0xff] }
  0xa4   : > { %1495 = vmatpush.msra.mxu1 %v1404_v29  ;;  %1546 = vmatpush.msra.mxu3 %v1431_v14  ;;  %v1593_v14 = vld [vmem:[%s2928_s25 + $0xf8] sm:$0xff] }
  0xa5   : > { %1466 = vmatpush.msra.mxu0 %v1394_v20  ;;  %1522 = vmatpush.msra.mxu2 %v1416_v4  ;;  %v1425_v20 = vld [vmem:[%s2853_s13 + $0x140] sm:$0xff]  ;;  %v1575_v4 = vld [vmem:[%s2928_s25 + $0x68] sm:$0xff] }
  0xa6   : > { %1496 = vmatpush.msra.mxu1 %v1403_v31  ;;  %1547 = vmatpush.msra.mxu3 %v1430_v15  ;;  %v1592_v15 = vld [vmem:[%s2928_s25 + $0xf0] sm:$0xff] }
  0xa7   : > { %1467 = vmatpush.msra.mxu0 %v1393_v21  ;;  %1523 = vmatpush.msra.mxu2 %v1415_v60  ;;  %v1424_v21 = vld [vmem:[%s2853_s13 + $0x138] sm:$0xff]  ;;  %v1599_v60 = vld [vmem:[%s2928_s25 + $0x128] sm:$0xff] }
  0xa8   : > { %1497 = vmatpush.msra.mxu1 %v1402_v33  ;;  %1548 = vmatpush.msra.mxu3 %v1429_v16  ;;  %v1570_v33 = vld [vmem:[%s2928_s25 + $0x40] sm:$0xff]  ;;  %v1591_v16 = vld [vmem:[%s2928_s25 + $0xe8] sm:$0xff] }
  0xa9   : > { %1468 = vmatpush.msra.mxu0 %v1392_v22  ;;  %1524 = vmatpush.msra.mxu2 %v1414_v6  ;;  %v1574_v22 = vld [vmem:[%s2928_s25 + $0x60] sm:$0xf]  ;;  %v1613_v6 = vld [vmem:[%s2928_s25 + $0x198] sm:$0xf] }
  0xaa   : > { %1498 = vmatpush.msra.mxu1 %v1401_v35  ;;  %1549 = vmatpush.msra.mxu3 %v1428_v17  ;;  %v1583_v35 = vld [vmem:[%s2928_s25 + $0xa8] sm:$0xff]  ;;  %v2383_v17 = vld [vmem:[%s2871_s15] ss:$0 sm:$0xff] }
  0xab   : > { %1469 = vmatpush.msra.mxu0 %v1391_v24  ;;  %1525 = vmatpush.msra.mxu2 %v1413_v8  ;;  %v2381_v24 = vld [vmem:[%s2709_s27 + $0x2] ss:$0 sm:$0xff]  ;;  %v1597_v8 = vld [vmem:[%s2928_s25 + $0x118] sm:$0xff] }
  0xac   : > { %1499 = vmatpush.msra.mxu1 %v1400_v37  ;;  %1550 = vmatpush.msra.mxu3 %v1427_v18  ;;  %v1569_v37 = vld [vmem:[%s2928_s25 + $0x38] sm:$0xff] }
  0xad   : > { %1470 = vmatpush.msra.mxu0 %v1390_v26  ;;  %1526 = vmatpush.msra.mxu2 %v1412_v11  ;;  %v1586_v26 = vld [vmem:[%s2928_s25 + $0xc0] sm:$0xff]  ;;  %v1596_v11 = vld [vmem:[%s2928_s25 + $0x110] sm:$0xff] }
  0xae   : > { %1500 = vmatpush.msra.mxu1 %v1399_v38  ;;  %1551 = vmatpush.msra.mxu3 %v1426_v19  ;;  %v1582_v38 = vld [vmem:[%s2928_s25 + $0xa0] sm:$0xff] }
  0xaf   : > { %1471 = vmatpush.msra.mxu0 %v1389_v28  ;;  %1527 = vmatpush.msra.mxu2 %v1411_v13  ;;  %v1585_v28 = vld [vmem:[%s2928_s25 + $0xb8] sm:$0xff]  ;;  %v1594_v13 = vld [vmem:[%s2928_s25 + $0x100] sm:$0xff] }
  0xb0   : > { %1501 = vmatpush.msra.mxu1 %v1398_v39  ;;  %1552 = vmatpush.msra.mxu3 %v1425_v20 }
  0xb1   : > { %1472 = vmatpush.msra.mxu0 %v1388_v30  ;;  %v1571_v30 = vld [vmem:[%s2928_s25 + $0x48] sm:$0xff]  ;;  %2312 = vmatpush.msk.msrb.mxu2 %vm1018_vm0, %v1600_v9  ;;  %v1738_v9 = vld [vmem:[%s3004_s16] sm:$0xff] }
  0xb2   : > { %1553 = vmatpush.msra.mxu3 %v1424_v21  ;;  %2310 = vmatpush.msk.msrb.mxu1 %vm1018_vm0, %v1587_v25  ;;  %v2384_v21 = vld [vmem:[%s2871_s15 + $0x1] ss:$0 sm:$0xff] }
  0xb3   : > { %1473 = vmatpush.msra.mxu0 %v1387_v32  ;;  %v1584_v32 = vld [vmem:[%s2928_s25 + $0xb0] sm:$0xff]  ;;  %1692 = vmatpush.msrb.mxu2 %v1599_v60  ;;  %v1590_v25 = vld [vmem:[%s2928_s25 + $0xe0] sm:$0xff]  ;;  %v1753_v60 = vld [vmem:[%s3004_s16 + $0x78] sm:$0xff] }
  0xb4   : > { %1666 = vmatpush.msrb.mxu1 %v1586_v26  ;;  %2314 = vmatpush.msk.msrb.mxu3 %vm1018_vm0, %v1613_v6  ;;  %v1610_v26 = vld [vmem:[%s2928_s25 + $0x180] sm:$0xff]  ;;  %v1751_v6 = vld [vmem:[%s3004_s16 + $0x68] sm:$0xff] }
  0xb5   : > { %1474 = vmatpush.msra.mxu0 %v1386_v34  ;;  %1693 = vmatpush.msrb.mxu2 %v1598_v5  ;;  %v1752_v5 = vld [vmem:[%s3004_s16 + $0x70] sm:$0xff] }
  0xb6   : > { %1667 = vmatpush.msrb.mxu1 %v1585_v28  ;;  %1718 = vmatpush.msrb.mxu3 %v1612_v7  ;;  %v1609_v28 = vld [vmem:[%s2928_s25 + $0x178] sm:$0xff]  ;;  %v1776_v7 = vld [vmem:[%s3004_s16 + $0x130] sm:$0xf] }
  0xb7   : > { %1475 = vmatpush.msra.mxu0 %v1385_v36  ;;  %1694 = vmatpush.msrb.mxu2 %v1597_v8  ;;  %v1775_v8 = vld [vmem:[%s3004_s16 + $0x128] sm:$0xff] }
  0xb8   : > { %1668 = vmatpush.msrb.mxu1 %v1584_v32  ;;  %1719 = vmatpush.msrb.mxu3 %v1611_v10  ;;  %v1606_v32 = vld [vmem:[%s2928_s25 + $0x160] sm:$0xff] }
  0xb9   : > { %2308 = vmatpush.msk.msrb.mxu0 %vm1018_vm0, %v1574_v22  ;;  %1695 = vmatpush.msrb.mxu2 %v1596_v11  ;;  %v1774_v10 = vld [vmem:[%s3004_s16 + $0x120] sm:$0xff]  ;;  %v1789_v11 = vld [vmem:[%s3004_s16 + $0x198] sm:$0xf] }
  0xba   : > { %1669 = vmatpush.msrb.mxu1 %v1583_v35  ;;  %1720 = vmatpush.msrb.mxu3 %v1610_v26  ;;  %v1603_v35 = vld [vmem:[%s2928_s25 + $0x148] sm:$0xff] }
  0xbb   : > { %1640 = vmatpush.msrb.mxu0 %v1573_v23  ;;  %1696 = vmatpush.msrb.mxu2 %v1595_v12  ;;  %v1788_v12 = vld [vmem:[%s3004_s16 + $0x190] sm:$0xff] }
  0xbc   : > { %1670 = vmatpush.msrb.mxu1 %v1582_v38  ;;  %1721 = vmatpush.msrb.mxu3 %v1609_v28  ;;  %v1750_v38 = vld [vmem:[%s3004_s16 + $0x60] sm:$0xf] }
  0xbd   : > { %1641 = vmatpush.msrb.mxu0 %v1572_v27  ;;  %1697 = vmatpush.msrb.mxu2 %v1594_v13  ;;  %v1589_v27 = vld [vmem:[%s2928_s25 + $0xd8] sm:$0xff] }
  0xbe   : > { %1671 = vmatpush.msrb.mxu1 %v1581_v42  ;;  %v1748_v42 = vld [vmem:[%s3004_s16 + $0x50] sm:$0xff]  ;;  %v1773_v13 = vld [vmem:[%s3004_s16 + $0x118] sm:$0xff] }
  0xbf   : > { %1642 = vmatpush.msrb.mxu0 %v1571_v30  ;;  %1698 = vmatpush.msrb.mxu2 %v1593_v14  ;;  %v1608_v30 = vld [vmem:[%s2928_s25 + $0x170] sm:$0xff]  ;;  %v1787_v14 = vld [vmem:[%s3004_s16 + $0x188] sm:$0xff] }
  0xc0   : > { %1722 = vmatpush.msrb.mxu3 %v1608_v30  ;;  %v1786_v30 = vld [vmem:[%s3004_s16 + $0x180] sm:$0xff] }
  0xc1   : > { %1643 = vmatpush.msrb.mxu0 %v1570_v33  ;;  %1699 = vmatpush.msrb.mxu2 %v1592_v15  ;;  %v1605_v33 = vld [vmem:[%s2928_s25 + $0x158] sm:$0xff]  ;;  %v1772_v15 = vld [vmem:[%s3004_s16 + $0x110] sm:$0xff] }
  0xc3   : > { %1644 = vmatpush.msrb.mxu0 %v1569_v37  ;;  %1700 = vmatpush.msrb.mxu2 %v1591_v16  ;;  %v1601_v37 = vld [vmem:[%s2928_s25 + $0x138] sm:$0xff]  ;;  %v1771_v16 = vld [vmem:[%s3004_s16 + $0x108] sm:$0xff] }
  0xc5   : > { %1645 = vmatpush.msrb.mxu0 %v1568_v40  ;;  %1701 = vmatpush.msrb.mxu2 %v1590_v25  ;;  %v1763_v40 = vld [vmem:[%s3004_s16 + $0xc8] sm:$0xf]  ;;  %v2388_v25 = vld [vmem:[%s2959_s30 + $0x1] ss:$0 sm:$0xff] }
  0xc7   : > { %1646 = vmatpush.msrb.mxu0 %v1567_v44  ;;  %1702 = vmatpush.msrb.mxu2 %v1589_v27  ;;  %v1747_v44 = vld [vmem:[%s3004_s16 + $0x48] sm:$0xff] }
  0xc9   : > { %v1099_v46 = vpop.f32.mrf.mxu3 }
  0xcd   : > { %v1039_v49 = vpop.f32.mrf.mxu0 }
  0xce   : > { %v1040_v50 = vadd.f32 %v2379_v47, %v1039_v49  ;;  %v1566_v47 = vld [vmem:[%s2928_s25 + $0x20] sm:$0xff]  ;;  %v1565_v49 = vld [vmem:[%s2928_s25 + $0x18] sm:$0xff] }
  0xcf   : > { %1647 = vmatpush.msrb.mxu0 %v1566_v47  ;;  %v1759_v47 = vld [vmem:[%s3004_s16 + $0xa8] sm:$0xff] }
  0xd0   : > { %v1059_v51 = vpop.f32.mrf.mxu1 }
  0xd1   : > { %v1060_v53 = vadd.f32 %v1059_v51, %v1040_v50  ;;  %v1079_v54 = vpop.f32.mrf.mxu2  ;;  %v2382_v50 = vld [vmem:[%s2709_s27 + $0x3] ss:$0 sm:$0xff]  ;;  %1648 = vmatpush.msrb.mxu0 %v1565_v49  ;;  %v2385_v49 = vld [vmem:[%s2871_s15 + $0x2] ss:$0 sm:$0xff] }
  0xd3   : > { %v1080_v55 = vadd.f32 %v1079_v54, %v1060_v53  ;;  %v1132_v56 = vpop.f32.mrf.mxu3 }
  0xd4   : > { %v1133_v57 = vadd.f32 %v2380_v52, %v1132_v56 }
  0xd5   : > { %v1100_v59 = vadd.f32 %v1099_v46, %v1080_v55  ;;  %v1580_v46 = vld [vmem:[%s2928_s25 + $0x90] sm:$0xff] }
  0xd6   : > { %1672 = vmatpush.msrb.mxu1 %v1580_v46  ;;  %v1746_v46 = vld [vmem:[%s3004_s16 + $0x40] sm:$0xff] }
  0xd7   : > { %v1381_v61 = vmax.f32 %v1100_v59, 0.0  ;;  %v1152_v62 = vpop.f32.mrf.mxu0 }
  0xd8   : > { %v1153_v63 = vadd.f32 %v1152_v62, %v1133_v57  ;;  %v1564_v62 = vld [vmem:[%s2928_s25 + $0x10] sm:$0xff] }
  0xd9   : > { %v1172_v0 = vpop.f32.mrf.mxu1  ;;  %2301 = vmatmul.msk.f32.vlgmr.msra.gmra.mxu0 %vm1453_vm2, %v1381_v61 }
  0xda   : > { %v1173_v1 = vadd.f32 %v1172_v0, %v1153_v63  ;;  %v1192_v2 = vpop.f32.mrf.mxu2  ;;  %v1579_v63 = vld [vmem:[%s2928_s25 + $0x88] sm:$0xff]  ;;  %1649 = vmatpush.msrb.mxu0 %v1564_v62  ;;  %v2386_v62 = vld [vmem:[%s2871_s15 + $0x3] ss:$0 sm:$0xff]  ;;  %s2338_s15 = smul.u32 56, %s3188_s26 }
  0xdb   : > { %v1563_v0 = vld [vmem:[%s2928_s25 + $0x8] sm:$0xff]  ;;  %1673 = vmatpush.msrb.mxu1 %v1579_v63 }
  0xdc   : > { %v1193_v58 = vadd.f32 %v1192_v2, %v1173_v1  ;;  %v1578_v1 = vld [vmem:[%s2928_s25 + $0x80] sm:$0xff]  ;;  %1650 = vmatpush.msrb.mxu0 %v1563_v0  ;;  %s3080_s29 = scalar_lea.vmem %s3172_s9, %s2338_s15 }
  0xdd   : > { %1674 = vmatpush.msrb.mxu1 %v1578_v1  ;;  %v1562_v2 = vld [vmem:[%s2928_s25] sm:$0xff] }
  0xde   : > { %v1382_v3 = vmax.f32 %v1193_v58, 0.0  ;;  %v1577_v58 = vld [vmem:[%s2928_s25 + $0x78] sm:$0xff]  ;;  %1651 = vmatpush.msrb.mxu0 %v1562_v2  ;;  %v1740_v2 = vld [vmem:[%s3004_s16 + $0x10] sm:$0xff] }
  0xdf   : > { %1675 = vmatpush.msrb.mxu1 %v1577_v58  ;;  %v1755_v58 = vld [vmem:[%s3004_s16 + $0x88] sm:$0xff] }
  0xe0   : > { %2303 = vmatmul.msk.f32.vlgmr.msra.gmra.mxu1 %vm1453_vm2, %v1382_v3  ;;  %v1576_v3 = vld [vmem:[%s2928_s25 + $0x70] sm:$0xff]  ;;  %2316 = vmatpush.msk.msra.mxu0 %vm1018_vm0, %v1750_v38 }
  0xe1   : > { %1676 = vmatpush.msrb.mxu1 %v1576_v3  ;;  %v1739_v3 = vld [vmem:[%s3004_s16 + $0x8] sm:$0xff]  ;;  %v1780_v38 = vld [vmem:[%s3004_s16 + $0x150] sm:$0xff] }
  0xe3   : > { %1677 = vmatpush.msrb.mxu1 %v1575_v4  ;;  %v1754_v4 = vld [vmem:[%s3004_s16 + $0x80] sm:$0xff] }
  0xe5   : > { %2318 = vmatpush.msk.msra.mxu1 %vm1018_vm0, %v1763_v40  ;;  %v1778_v40 = vld [vmem:[%s3004_s16 + $0x140] sm:$0xff] }
 0x104   : > { %v1225_v29 = vpop.f32.mrf.mxu2 }
 0x105   : > { %v1226_v31 = vadd.f32 %v2381_v24, %v1225_v29  ;;  %v1588_v29 = vld [vmem:[%s2928_s25 + $0xd0] sm:$0xff] }
 0x106   : > { %1703 = vmatpush.msrb.mxu2 %v1588_v29  ;;  %v1766_v29 = vld [vmem:[%s3004_s16 + $0xe0] sm:$0xff] }
 0x107   : > { %v1245_v34 = vpop.f32.mrf.mxu3 }
 0x108   : > { %v1246_v36 = vadd.f32 %v1245_v34, %v1226_v31  ;;  %v1607_v31 = vld [vmem:[%s2928_s25 + $0x168] sm:$0xff]  ;;  %v1604_v34 = vld [vmem:[%s2928_s25 + $0x150] sm:$0xff] }
 0x109   : > { %1723 = vmatpush.msrb.mxu3 %v1607_v31  ;;  %v1765_v31 = vld [vmem:[%s3004_s16 + $0xd8] sm:$0xff] }
 0x10a   : > { %v1265_v39 = vpop.f32.mrf.mxu0 }
 0x10b   : > { %v1266_v41 = vadd.f32 %v1265_v39, %v1246_v36  ;;  %1724 = vmatpush.msrb.mxu3 %v1606_v32  ;;  %v1602_v36 = vld [vmem:[%s2928_s25 + $0x140] sm:$0xff]  ;;  %v1749_v39 = vld [vmem:[%s3004_s16 + $0x58] sm:$0xff] }
 0x10c   : > { %v1285_v43 = vpop.f32.mrf.mxu1  ;;  %1816 = vmatpush.msra.mxu0 %v1749_v39  ;;  %v1785_v32 = vld [vmem:[%s3004_s16 + $0x178] sm:$0xff]  ;;  %v1779_v39 = vld [vmem:[%s3004_s16 + $0x148] sm:$0xff] }
 0x10d   : > { %v1286_v45 = vadd.f32 %v1285_v43, %v1266_v41  ;;  %1725 = vmatpush.msrb.mxu3 %v1605_v33  ;;  %v1762_v41 = vld [vmem:[%s3004_s16 + $0xc0] sm:$0xff]  ;;  %v1761_v43 = vld [vmem:[%s3004_s16 + $0xb8] sm:$0xff]  ;;  %v1764_v33 = vld [vmem:[%s3004_s16 + $0xd0] sm:$0xff] }
 0x10e   : > { %1842 = vmatpush.msra.mxu1 %v1762_v41  ;;  %1817 = vmatpush.msra.mxu0 %v1748_v42  ;;  %v1777_v41 = vld [vmem:[%s3004_s16 + $0x138] sm:$0xff]  ;;  %v1920_v42 = vld [vmem:[%s3080_s29 + $0x30] sm:$0x3] }
 0x10f   : > { %v1383_v48 = vmax.f32 %v1286_v45, 0.0  ;;  %1726 = vmatpush.msrb.mxu3 %v1604_v34  ;;  %v1760_v45 = vld [vmem:[%s3004_s16 + $0xb0] sm:$0xff] }
 0x110   : > { %1843 = vmatpush.msra.mxu1 %v1761_v43  ;;  %1818 = vmatpush.msra.mxu0 %v1747_v44  ;;  %v1784_v34 = vld [vmem:[%s3004_s16 + $0x170] sm:$0xff]  ;;  %v1919_v43 = vld [vmem:[%s3080_s29 + $0x28] sm:$0xff] }
 0x111   : > { %2305 = vmatmul.msk.f32.vlgmr.msra.gmra.mxu2 %vm1453_vm2, %v1383_v48  ;;  %1727 = vmatpush.msrb.mxu3 %v1603_v35  ;;  %v1745_v48 = vld [vmem:[%s3004_s16 + $0x38] sm:$0xff]  ;;  %v1783_v35 = vld [vmem:[%s3004_s16 + $0x168] sm:$0xff] }
 0x112   : > { %1844 = vmatpush.msra.mxu1 %v1760_v45  ;;  %1819 = vmatpush.msra.mxu0 %v1746_v46  ;;  %v1927_v44 = vld [vmem:[%s3080_s29 + $0x68] sm:$0x3]  ;;  %v1926_v45 = vld [vmem:[%s3080_s29 + $0x60] sm:$0xff] }
 0x113   : > { %1728 = vmatpush.msrb.mxu3 %v1602_v36  ;;  %2320 = vmatpush.msk.msra.mxu2 %vm1018_vm0, %v1776_v7  ;;  %v1782_v36 = vld [vmem:[%s3004_s16 + $0x160] sm:$0xff] }
 0x114   : > { %v1318_v51 = vpop.f32.mrf.mxu1  ;;  %1845 = vmatpush.msra.mxu1 %v1759_v47  ;;  %1820 = vmatpush.msra.mxu0 %v1745_v48  ;;  %v1918_v46 = vld [vmem:[%s3080_s29 + $0x20] sm:$0xff]  ;;  %v1917_v47 = vld [vmem:[%s3080_s29 + $0x18] sm:$0xff] }
 0x115   : > { %v1319_v52 = vadd.f32 %v2382_v50, %v1318_v51  ;;  %1729 = vmatpush.msrb.mxu3 %v1601_v37  ;;  %v1758_v50 = vld [vmem:[%s3004_s16 + $0xa0] sm:$0xff]  ;;  %v1744_v51 = vld [vmem:[%s3004_s16 + $0x30] sm:$0xff]  ;;  %1868 = vmatpush.msra.mxu2 %v1775_v8  ;;  %v1781_v37 = vld [vmem:[%s3004_s16 + $0x158] sm:$0xff] }
 0x116   : > { %v1338_v53 = vpop.f32.mrf.mxu2  ;;  %1846 = vmatpush.msra.mxu1 %v1758_v50  ;;  %1821 = vmatpush.msra.mxu0 %v1744_v51  ;;  %v2389_v48 = vld [vmem:[%s2959_s30 + $0x2] ss:$0 sm:$0xff]  ;;  %v2392_v7 = vld [vmem:[%s3035_s24 + $0x1] ss:$0 sm:$0xff] }
 0x117   : > { %v1339_v54 = vadd.f32 %v1338_v53, %v1319_v52  ;;  %v1757_v52 = vld [vmem:[%s3004_s16 + $0x98] sm:$0xff]  ;;  %1869 = vmatpush.msra.mxu2 %v1774_v10 }
 0x118   : > { %v1358_v55 = vpop.f32.mrf.mxu3  ;;  %1847 = vmatpush.msra.mxu1 %v1757_v52  ;;  %v2390_v52 = vld [vmem:[%s2959_s30 + $0x3] ss:$0 sm:$0xff] }
 0x119   : > { %v1359_v56 = vadd.f32 %v1358_v55, %v1339_v54  ;;  %v1743_v54 = vld [vmem:[%s3004_s16 + $0x28] sm:$0xff]  ;;  %1870 = vmatpush.msra.mxu2 %v1773_v13  ;;  %v1929_v13 = vld [vmem:[%s3080_s29 + $0x78] sm:$0xff] }
 0x11a   : > { %1822 = vmatpush.msra.mxu0 %v1743_v54 }
 0x11b   : > { %v1378_v57 = vpop.f32.mrf.mxu0  ;;  %1871 = vmatpush.msra.mxu2 %v1772_v15  ;;  %v1941_v15 = vld [vmem:[%s3080_s29 + $0xd8] sm:$0x3] }
 0x11c   : > { %v1379_v59 = vadd.f32 %v1378_v57, %v1359_v56  ;;  %v1756_v56 = vld [vmem:[%s3004_s16 + $0x90] sm:$0xff]  ;;  %v1742_v57 = vld [vmem:[%s3004_s16 + $0x20] sm:$0xff] }
 0x11d   : > { %1848 = vmatpush.msra.mxu1 %v1756_v56  ;;  %1823 = vmatpush.msra.mxu0 %v1742_v57  ;;  %v1916_v56 = vld [vmem:[%s3080_s29 + $0x10] sm:$0xff]  ;;  %v1925_v57 = vld [vmem:[%s3080_s29 + $0x58] sm:$0xff] }
 0x11e   : > { %v1384_v61 = vmax.f32 %v1379_v59, 0.0  ;;  %1872 = vmatpush.msra.mxu2 %v1771_v16  ;;  %v1940_v16 = vld [vmem:[%s3080_s29 + $0xd0] sm:$0xff] }
 0x11f   : > { %1849 = vmatpush.msra.mxu1 %v1755_v58  ;;  %v1933_v58 = vld [vmem:[%s3080_s29 + $0x98] sm:$0xff] }
 0x120   : > { %2307 = vmatmul.msk.f32.vlgmr.msra.gmra.mxu3 %vm1453_vm2, %v1384_v61  ;;  %v1741_v61 = vld [vmem:[%s3004_s16 + $0x18] sm:$0xff] }
 0x121   : > { %1824 = vmatpush.msra.mxu0 %v1741_v61  ;;  %1850 = vmatpush.msra.mxu1 %v1754_v4  ;;  %v1924_v61 = vld [vmem:[%s3080_s29 + $0x50] sm:$0xff]  ;;  %v1931_v4 = vld [vmem:[%s3080_s29 + $0x88] sm:$0xff] }
 0x122   : > { %2322 = vmatpush.msk.msra.mxu3 %vm1018_vm0, %v1789_v11 }
 0x123   : > { %1825 = vmatpush.msra.mxu0 %v1740_v2  ;;  %1851 = vmatpush.msra.mxu1 %v1753_v60  ;;  %v1934_v2 = vld [vmem:[%s3080_s29 + $0xa0] sm:$0x3] }
 0x124   : > { %1894 = vmatpush.msra.mxu3 %v1788_v12  ;;  %v1930_v12 = vld [vmem:[%s3080_s29 + $0x80] sm:$0xff] }
 0x125   : > { %1826 = vmatpush.msra.mxu0 %v1739_v3  ;;  %1852 = vmatpush.msra.mxu1 %v1752_v5  ;;  %v1932_v3 = vld [vmem:[%s3080_s29 + $0x90] sm:$0xff] }
 0x126   : > { %1895 = vmatpush.msra.mxu3 %v1787_v14  ;;  %v1928_v14 = vld [vmem:[%s3080_s29 + $0x70] sm:$0xff] }
 0x127   : > { %1827 = vmatpush.msra.mxu0 %v1738_v9  ;;  %1853 = vmatpush.msra.mxu1 %v1751_v6  ;;  %v2391_v9 = vld [vmem:[%s3035_s24] ss:$0 sm:$0xff] }
 0x128   : > { %1896 = vmatpush.msra.mxu3 %v1786_v30 }
 0x12a   : > { %1897 = vmatpush.msra.mxu3 %v1785_v32 }
 0x12c   : > { %1898 = vmatpush.msra.mxu3 %v1784_v34 }
 0x12e   : > { %1899 = vmatpush.msra.mxu3 %v1783_v35 }
 0x130   : > { %1900 = vmatpush.msra.mxu3 %v1782_v36 }
 0x132   : > { %1901 = vmatpush.msra.mxu3 %v1781_v37 }
 0x134   : > { %1902 = vmatpush.msra.mxu3 %v1780_v38 }
 0x136   : > { %1903 = vmatpush.msra.mxu3 %v1779_v39 }
 0x138   : > { %1904 = vmatpush.msra.mxu3 %v1778_v40 }
 0x13a   : > { %1905 = vmatpush.msra.mxu3 %v1777_v41 }
 0x156   : > { %v1477_v18 = vpop.f32.mrf.mxu0 }
 0x157   : > { %v1478_v19 = vadd.f32 %v2383_v17, %v1477_v18  ;;  %v1770_v17 = vld [vmem:[%s3004_s16 + $0x100] sm:$0xff]  ;;  %v1769_v18 = vld [vmem:[%s3004_s16 + $0xf8] sm:$0xff] }
 0x158   : > { %1873 = vmatpush.msra.mxu2 %v1770_v17  ;;  %v1939_v17 = vld [vmem:[%s3080_s29 + $0xc8] sm:$0xff] }
 0x159   : > { %v1558_v20 = vmax.f32 %v1478_v19, 0.0  ;;  %v1768_v19 = vld [vmem:[%s3004_s16 + $0xf0] sm:$0xff] }
 0x15a   : > { %1874 = vmatpush.msra.mxu2 %v1769_v18  ;;  %v1938_v18 = vld [vmem:[%s3080_s29 + $0xc0] sm:$0xff] }
 0x15b   : > { %2309 = vmatmul.msk.f32.vlgmr.msrb.gmra.mxu0 %vm1453_vm2, %v1558_v20  ;;  %v1767_v20 = vld [vmem:[%s3004_s16 + $0xe8] sm:$0xff]  ;;  %s3099_s16 = scalar_lea.vmem %s3173_s10, %s3188_s26 }
 0x15c   : > { %1875 = vmatpush.msra.mxu2 %v1768_v19  ;;  %2324 = vmatpush.msk.msrb.mxu0 %vm1962_vm3, %v1920_v42  ;;  %v1937_v19 = vld [vmem:[%s3080_s29 + $0xb8] sm:$0xff]  ;;  %v2396_v30 = vld [vmem:[%s3099_s16 + $0x1] ss:$0 sm:$0xff]  ;;  %v2395_v32 = vld [vmem:[%s3099_s16] ss:$0 sm:$0xff] }
 0x15d   : > { %v1503_v22 = vpop.f32.mrf.mxu1  ;;  %v2398_v37 = vld [vmem:[%s3099_s16 + $0x3] ss:$0 sm:$0xff] }
 0x15e   : > { %v1504_v23 = vadd.f32 %v2384_v21, %v1503_v22  ;;  %v2387_v21 = vld [vmem:[%s2959_s30] ss:$0 sm:$0xff]  ;;  %1876 = vmatpush.msra.mxu2 %v1767_v20  ;;  %1976 = vmatpush.msrb.mxu0 %v1919_v43  ;;  %v1936_v20 = vld [vmem:[%s3080_s29 + $0xb0] sm:$0xff] }
 0x160   : > { %v1559_v24 = vmax.f32 %v1504_v23, 0.0  ;;  %1877 = vmatpush.msra.mxu2 %v1766_v29  ;;  %1977 = vmatpush.msrb.mxu0 %v1918_v46 }
 0x162   : > { %2311 = vmatmul.msk.f32.vlgmr.msrb.gmra.mxu1 %vm1453_vm2, %v1559_v24  ;;  %1878 = vmatpush.msra.mxu2 %v1765_v31 }
 0x163   : > { %2326 = vmatpush.msk.msrb.mxu1 %vm1962_vm3, %v1927_v44  ;;  %1978 = vmatpush.msrb.mxu0 %v1917_v47 }
 0x164   : > { %1879 = vmatpush.msra.mxu2 %v1764_v33  ;;  %v2397_v33 = vld [vmem:[%s3099_s16 + $0x2] ss:$0 sm:$0xff] }
 0x165   : > { %2002 = vmatpush.msrb.mxu1 %v1926_v45  ;;  %1979 = vmatpush.msrb.mxu0 %v1916_v56 }
 0x167   : > { %2003 = vmatpush.msrb.mxu1 %v1925_v57 }
 0x169   : > { %2004 = vmatpush.msrb.mxu1 %v1924_v61 }
 0x194   : > { %v1529_v53 = vpop.f32.mrf.mxu2 }
 0x195   : > { %v1530_v55 = vadd.f32 %v2385_v49, %v1529_v53 }
 0x197   : > { %v1560_v59 = vmax.f32 %v1530_v55, 0.0 }
 0x199   : > { %2313 = vmatmul.msk.f32.vlgmr.msrb.gmra.mxu2 %vm1453_vm2, %v1560_v59  ;;  %v1915_v59 = vld [vmem:[%s3080_s29 + $0x8] sm:$0xff] }
 0x19a   : > { %1980 = vmatpush.msrb.mxu0 %v1915_v59  ;;  %2328 = vmatpush.msk.msrb.mxu2 %vm1962_vm3, %v1934_v2 }
 0x19c   : > { %2028 = vmatpush.msrb.mxu2 %v1933_v58 }
 0x19e   : > { %2029 = vmatpush.msrb.mxu2 %v1932_v3 }
 0x1a0   : > { %2030 = vmatpush.msrb.mxu2 %v1931_v4 }
 0x1a2   : > { %2031 = vmatpush.msrb.mxu2 %v1930_v12 }
 0x1a3   : > { %v1555_v63 = vpop.f32.mrf.mxu3 }
 0x1a4   : > { %v1556_v0 = vadd.f32 %v2386_v62, %v1555_v63  ;;  %v1914_v62 = vld [vmem:[%s3080_s29] sm:$0xff]  ;;  %v1923_v63 = vld [vmem:[%s3080_s29 + $0x48] sm:$0xff]  ;;  %2032 = vmatpush.msrb.mxu2 %v1929_v13 }
 0x1a5   : > { %1981 = vmatpush.msrb.mxu0 %v1914_v62  ;;  %2005 = vmatpush.msrb.mxu1 %v1923_v63 }
 0x1a6   : > { %v1561_v1 = vmax.f32 %v1556_v0, 0.0  ;;  %v1922_v0 = vld [vmem:[%s3080_s29 + $0x40] sm:$0xff]  ;;  %2033 = vmatpush.msrb.mxu2 %v1928_v14 }
 0x1a7   : > { %2006 = vmatpush.msrb.mxu1 %v1922_v0 }
 0x1a8   : > { %2315 = vmatmul.msk.f32.vlgmr.msrb.gmra.mxu3 %vm1453_vm2, %v1561_v1  ;;  %v1921_v1 = vld [vmem:[%s3080_s29 + $0x38] sm:$0xff] }
 0x1a9   : > { %2007 = vmatpush.msrb.mxu1 %v1921_v1  ;;  %2330 = vmatpush.msk.msrb.mxu3 %vm1962_vm3, %v1941_v15 }
 0x1ab   : > { %2054 = vmatpush.msrb.mxu3 %v1940_v16 }
 0x1ad   : > { %2055 = vmatpush.msrb.mxu3 %v1939_v17 }
 0x1af   : > { %2056 = vmatpush.msrb.mxu3 %v1938_v18 }
 0x1b1   : > { %2057 = vmatpush.msrb.mxu3 %v1937_v19 }
 0x1b3   : > { %2058 = vmatpush.msrb.mxu3 %v1936_v20 }
 0x1d8   : > { %v1653_v22 = vpop.f32.mrf.mxu0 }
 0x1d9   : > { %v1654_v23 = vadd.f32 %v2387_v21, %v1653_v22  ;;  %v1935_v21 = vld [vmem:[%s3080_s29 + $0xa8] sm:$0xff]  ;;  %v2393_v22 = vld [vmem:[%s3035_s24 + $0x2] ss:$0 sm:$0xff] }
 0x1da   : > { %2059 = vmatpush.msrb.mxu3 %v1935_v21 }
 0x1db   : > { %v1734_v24 = vmax.f32 %v1654_v23, 0.0 }
 0x1dd   : > { %2317 = vmatmul.msk.f32.vlgmr.msra.gmra.mxu0 %vm1453_vm2, %v1734_v24 }
 0x1df   : > { %v1679_v26 = vpop.f32.mrf.mxu1 }
 0x1e0   : > { %v1680_v27 = vadd.f32 %v2388_v25, %v1679_v26  ;;  %v2394_v26 = vld [vmem:[%s3035_s24 + $0x3] ss:$0 sm:$0xff] }
 0x1e2   : > { %v1735_v28 = vmax.f32 %v1680_v27, 0.0 }
 0x1e4   : > { %2319 = vmatmul.msk.f32.vlgmr.msra.gmra.mxu1 %vm1453_vm2, %v1735_v28 }
 0x21c   : > { %v1705_v49 = vpop.f32.mrf.mxu2 }
 0x21d   : > { %v1706_v50 = vadd.f32 %v2389_v48, %v1705_v49 }
 0x21f   : > { %v1736_v51 = vmax.f32 %v1706_v50, 0.0 }
 0x221   : > { %2321 = vmatmul.msk.f32.vlgmr.msra.gmra.mxu2 %vm1453_vm2, %v1736_v51 }
 0x22b   : > { %v1731_v53 = vpop.f32.mrf.mxu3 }
 0x22c   : > { %v1732_v54 = vadd.f32 %v2390_v52, %v1731_v53 }
 0x22e   : > { %v1737_v55 = vmax.f32 %v1732_v54, 0.0 }
 0x230   : > { %2323 = vmatmul.msk.f32.vlgmr.msra.gmra.mxu3 %vm1453_vm2, %v1737_v55 }
 0x25a   : > { %v1829_v60 = vpop.f32.mrf.mxu0 }
 0x25b   : > { %v1830_v5 = vadd.f32 %v2391_v9, %v1829_v60 }
 0x25d   : > { %v1910_v6 = vmax.f32 %v1830_v5, 0.0 }
 0x25f   : > { %2325 = vmatmul.msk.f32.vlgmr.msrb.gmra.mxu0 %vm1958_vm4, %v1910_v6 }
 0x261   : > { %v1855_v8 = vpop.f32.mrf.mxu1 }
 0x262   : > { %v1856_v10 = vadd.f32 %v2392_v7, %v1855_v8 }
 0x264   : > { %v1911_v11 = vmax.f32 %v1856_v10, 0.0 }
 0x266   : > { %2327 = vmatmul.msk.f32.vlgmr.msrb.gmra.mxu1 %vm1958_vm4, %v1911_v11 }
 0x2a4   : > { %v1881_v23 = vpop.f32.mrf.mxu2 }
 0x2a5   : > { %v1882_v24 = vadd.f32 %v2393_v22, %v1881_v23 }
 0x2a7   : > { %v1912_v25 = vmax.f32 %v1882_v24, 0.0 }
 0x2a9   : > { %2329 = vmatmul.msk.f32.vlgmr.msrb.gmra.mxu2 %vm1958_vm4, %v1912_v25 }
 0x2b3   : > { %v1907_v27 = vpop.f32.mrf.mxu3 }
 0x2b4   : > { %v1908_v28 = vadd.f32 %v2394_v26, %v1907_v27 }
 0x2b6   : > { %v1913_v29 = vmax.f32 %v1908_v28, 0.0 }
 0x2b8   : > { %2331 = vmatmul.msk.f32.vlgmr.msrb.gmra.mxu3 %vm1958_vm4, %v1913_v29 }
 0x2dc   : > { %v1983_v34 = vpop.f32.mrf.mxu0 }
 0x2dd   : > { %v1984_v38 = vadd.f32 %v2395_v32, %v1983_v34 }
 0x2df   : > { %v2065_v43 = vsel %vm2064_vm5, %v1984_v38, -inf }
 0x2e3   : > { %v2009_v31 = vpop.f32.mrf.mxu1 }
 0x2e4   : > { %v2010_v36 = vadd.f32 %v2396_v30, %v2009_v31 }
 0x2e6   : > { %v2066_v41 = vsel %vm2064_vm5, %v2010_v36, -inf }
 0x2e7   : > { %v2069_v46 = vmax.f32 %v2065_v43, %v2066_v41 }
 0x32c   : > { %v2035_v35 = vpop.f32.mrf.mxu2 }
 0x32d   : > { %v2036_v39 = vadd.f32 %v2397_v33, %v2035_v35 }
 0x32f   : > { %v2067_v44 = vsel %vm2064_vm5, %v2036_v39, -inf }
 0x33b   : > { %v2061_v40 = vpop.f32.mrf.mxu3 }
 0x33c   : > { %v2062_v42 = vadd.f32 %v2398_v37, %v2061_v40 }
 0x33d   : > { %2075 = sbr.rel (%p2332_p7) target bundleno = 836 (0x344), region = 68 }
 0x33e   : > { %v2068_v45 = vsel %vm2064_vm5, %v2062_v42, -inf }
 0x33f   : > { %v2070_v47 = vmax.f32 %v2067_v44, %v2068_v45 }
 0x341   : > { %v2071_v48 = vmax.f32 %v2069_v46, %v2070_v47 }
 0x343   : > { %2076 = vst.msk [vmem:[%s2538_s12] sm:$0x3] %vm2064_vm5, %v2071_v48 }
 0x344 PF: > { %p2333_p8 = scmp.le.s32.totalorder %s2421_s17, 0 }
 0x346   : > { %2080 = sbr.rel (%p2333_p8) target bundleno = 847 (0x34f), region = 72 }
 0x34b   : > { %v2081_v49 = vld [vmem:[%s2538_s12] sm:$0x3] }
 0x34c   : > { %v2082_v50 = vmax.f32 %v2081_v49, %v2071_v48 }
 0x34e   : > { %2083 = vst.msk [vmem:[%s2538_s12] sm:$0x3] %vm2064_vm5, %v2082_v50 }
 0x34f PF: > { %s21_s21 = sadd.s32 1, %s2437_s21   ;;  %s3175_s17 = smov %s2429_s19 }
 0x350   : > { %p18_p9 = scmp.ge.s32.totalorder %s21_s21, 6   ;;  %s3176_s18 = smov %s2433_s20 }
 0x351   : > { %s3177_s19 = smov %s3180_s22  ;;  %s3178_s20 = smov %s3184_s23 }
 0x352   :  { %20 = sbr.rel (!%p18_p9) target bundleno = 3 (0x3), region = 129 }

</bundles_post_ra>
